<compile_context>
chip_gen: v7x
topology: tpu7x:2x2x1
jax: 0.10.0
libtpu: 0.0.40
codegen_flags: <defaults>
</compile_context>

<pallas_src>
import functools

import jax
import jax.numpy as jnp
import numpy as np
from jax.experimental import pallas as pl
from jax.experimental.pallas import tpu as pltpu


# ------------------------------ fused kernel -------------------------------

def _net_kernel(bb, a1_ref, w1b_ref, b1c_ref, w2k_ref, b2c_ref,
                w1f_ref, b1f_ref, w2f_ref, b2f_ref, out_ref, p1_s):
    # bb = batch-block size (static Python int)
    n1 = 16 * bb           # rows per pool1 quadrant block: (ii in [0,16), b)
    m2 = 12 * bb           # conv2 output rows: (oi in [0,12), b); oi<8 valid

    # ---- conv1: one MXU GEMM, K=400, output lanes = (jj, cin) = 160 --------
    a1 = a1_ref[0]                                            # (64*bb, 400)
    y1 = jnp.dot(a1, w1b_ref[...],
                 preferred_element_type=jnp.float32) + b1c_ref[...]

    # ---- maxpool(2x2) + relu: 4 quadrant row blocks, then ONE scratch store
    p1 = jnp.maximum(jnp.maximum(y1[0:n1], y1[n1:2 * n1]),
                     jnp.maximum(y1[2 * n1:3 * n1], y1[3 * n1:4 * n1]))
    p1_s[...] = jnp.maximum(p1, 0.0)      # (16*bb, 160): rows (ii,b), lanes (jj,c)

    # ---- conv2: 5 banded GEMMs (one per kh), each A = one contiguous window
    acc = jnp.zeros((m2, 160), jnp.float32)
    for kh in range(5):
        a = p1_s[kh * bb:kh * bb + m2, :]                     # (12*bb, 160)
        acc = acc + jnp.dot(a, w2k_ref[kh],
                            preferred_element_type=jnp.float32)
    y2 = acc + b2c_ref[...]        # rows (oi, b), lanes (oj in [0,8), cout)

    # ---- maxpool(2x2) + relu, flatten folded into lane concat --------------
    # width-pair max: valid pooled value at lane 40*ooj + cout
    mj = jnp.maximum(y2[:, 0:140], y2[:, 20:160])             # (12*bb, 140)
    # height-pair max: rows (2*ooi, b) vs (2*ooi+1, b); concat the 4 ooi slabs
    blocks = []
    for ooi in range(4):
        r0 = 2 * ooi * bb
        blocks.append(jnp.maximum(mj[r0:r0 + bb, :],
                                  mj[r0 + bb:r0 + 2 * bb, :]))  # (bb, 140)
    flat = jnp.maximum(jnp.concatenate(blocks, axis=-1), 0.0)   # (bb, 560)
    # garbage lanes in `flat` are finite and hit zero rows of w1f.

    # ---- fused fc1 + relu + fc2 + log_softmax head --------------------------
    h = jnp.maximum(
        jnp.dot(flat, w1f_ref[...], preferred_element_type=jnp.float32)
        + b1f_ref[...], 0.0)                                    # (bb, 50)
    logits = (jnp.dot(h, w2f_ref[...], preferred_element_type=jnp.float32)
              + b2f_ref[...])                                   # (bb, 10)
    m = jnp.max(logits, axis=-1, keepdims=True)
    s = logits - m
    lse = jnp.log(jnp.sum(jnp.exp(s), axis=-1, keepdims=True))
    out_ref[...] = s - lse


# --------------------------- wrapper-side packing ---------------------------

def net_forward(x_nchw, params):
    B = x_nchw.shape[0]
    x = x_nchw.astype(jnp.float32)

    # batch-block tiling (parallel grid axis); pad batch to a whole block
    Bb = min(B, 8)
    nb = -(-B // Bb)
    Bp = nb * Bb
    if Bp != B:
        x = jnp.pad(x, ((0, Bp - B), (0, 0), (0, 0), (0, 0)))

    # ---- conv1 im2col: rows (block | quad, ii, b), lanes (jj, tap) ----------
    x2 = x[:, 0, :, :]                                          # (Bp, 28, 28)
    patches = jnp.stack([x2[:, kh:kh + 24, kw:kw + 24]
                         for kh in range(5) for kw in range(5)], axis=-1)
    p = patches.reshape(Bp, 12, 2, 12, 2, 25)                   # (b,ii,d1i,jj,d1j,t)
    p = jnp.pad(p, ((0, 0), (0, 4), (0, 0), (0, 4), (0, 0), (0, 0)))  # ii,jj->16
    p = p.reshape(nb, Bb, 16, 2, 16, 2, 25)
    p = jnp.transpose(p, (0, 3, 5, 2, 1, 4, 6))                 # (i,d1i,d1j,ii,b,jj,t)
    a1 = p.reshape(nb, 4 * 16 * Bb, 400)

    # conv1 weights as a jj-block-diagonal GEMM matrix (400, 160)
    w1m = params["conv1_w"].reshape(10, 25).T                   # (25, 10)
    w1b = jnp.einsum('jk,tc->jtkc', jnp.eye(16, dtype=jnp.float32),
                     w1m).reshape(400, 160)
    b1c = jnp.tile(params["conv1_b"], 16).reshape(1, 160)

    # conv2 weights as 5 banded (block-Toeplitz over width) matrices (160,160)
    sel = (jnp.arange(16)[None, :, None]
           == jnp.arange(8)[None, None, :] + jnp.arange(5)[:, None, None]
           ).astype(jnp.float32)                                # (kw, jj, oj)
    w2t = jnp.transpose(params["conv2_w"], (2, 3, 1, 0))        # (kh, kw, cin, cout)
    w2k = jnp.einsum('wjo,hwcd->hjcod', sel, w2t).reshape(5, 160, 160)
    b2c = jnp.tile(params["conv2_b"], 8).reshape(1, 160)

    # fc1 weight: NCHW flatten permutation + zero rows for garbage lanes
    w1r = jnp.transpose(params["fc1_w"].reshape(50, 20, 4, 4), (2, 3, 1, 0))
    w1r = jnp.pad(w1r, ((0, 0), (0, 0), (0, 20), (0, 0)))       # (4,4,40,50)
    w1f = w1r.reshape(4, 160, 50)[:, :140, :].reshape(560, 50)
    b1f = params["fc1_b"].reshape(1, 50)
    w2f = jnp.transpose(params["fc2_w"])                        # (50, 10)
    b2f = params["fc2_b"].reshape(1, 10)

    def _resident(a):                                           # weight stays put
        return pl.BlockSpec(a.shape, lambda i: (0, 0))

    flops = 2 * (64 * Bp * 400 * 160 + 5 * 12 * Bp * 160 * 160
                 + Bp * 560 * 50 + Bp * 50 * 10)
    bytes_acc = 4 * int(a1.size + w1b.size + b1c.size + w2k.size + b2c.size
                        + w1f.size + b1f.size + w2f.size + b2f.size + Bp * 10)

    out = pl.pallas_call(
        functools.partial(_net_kernel, Bb),
        out_shape=jax.ShapeDtypeStruct((Bp, 10), jnp.float32),
        grid=(nb,),
        in_specs=[pl.BlockSpec((1, 64 * Bb, 400), lambda i: (i, 0, 0)),
                  _resident(w1b), _resident(b1c),
                  pl.BlockSpec((5, 160, 160), lambda i: (0, 0, 0)),
                  _resident(b2c), _resident(w1f), _resident(b1f),
                  _resident(w2f), _resident(b2f)],
        out_specs=pl.BlockSpec((Bb, 10), lambda i: (i, 0)),
        scratch_shapes=[pltpu.VMEM((16 * Bb, 160), jnp.float32)],
        compiler_params=pltpu.CompilerParams(
            dimension_semantics=("parallel",)),
        cost_estimate=pl.CostEstimate(flops=flops, transcendentals=11 * Bp,
                                      bytes_accessed=bytes_acc),
    )(a1, w1b, b1c, w2k, b2c, w1f, b1f, w2f, b2f)
    return out[:B]


# -------------------------- parameters / reference -------------------------

def init_params(key):
    ks = jax.random.split(key, 8)

    def u(k, shape, fan_in):
        bound = 1.0 / np.sqrt(fan_in)
        return jax.random.uniform(k, shape, jnp.float32, -bound, bound)

    return {
        "conv1_w": u(ks[0], (10, 1, 5, 5), 1 * 5 * 5),
        "conv1_b": u(ks[1], (10,), 1 * 5 * 5),
        "conv2_w": u(ks[2], (20, 10, 5, 5), 10 * 5 * 5),
        "conv2_b": u(ks[3], (20,), 10 * 5 * 5),
        "fc1_w": u(ks[4], (50, 320), 320),
        "fc1_b": u(ks[5], (50,), 320),
        "fc2_w": u(ks[6], (10, 50), 50),
        "fc2_b": u(ks[7], (10,), 50),
    }


def ref_forward(x_nchw, params):
    """Pure-JAX reference mirroring the PyTorch forward (sanity check)."""
    dn = ("NCHW", "OIHW", "NCHW")
    x = jax.lax.conv_general_dilated(x_nchw, params["conv1_w"], (1, 1), "VALID",
                                     dimension_numbers=dn)
    x = x + params["conv1_b"].reshape(1, -1, 1, 1)
    x = jax.lax.reduce_window(x, -jnp.inf, jax.lax.max,
                              (1, 1, 2, 2), (1, 1, 2, 2), "VALID")
    x = jnp.maximum(x, 0.0)
    x = jax.lax.conv_general_dilated(x, params["conv2_w"], (1, 1), "VALID",
                                     dimension_numbers=dn)
    x = x + params["conv2_b"].reshape(1, -1, 1, 1)
    x = jax.lax.reduce_window(x, -jnp.inf, jax.lax.max,
                              (1, 1, 2, 2), (1, 1, 2, 2), "VALID")
    x = jnp.maximum(x, 0.0)
    x = x.reshape(x.shape[0], -1)
    x = jnp.maximum(x @ params["fc1_w"].T + params["fc1_b"], 0.0)
    x = x @ params["fc2_w"].T + params["fc2_b"]
    return jax.nn.log_softmax(x, axis=1)


# ---------------------------------- main ------------------------------------

if __name__ == "__main__":
    key = jax.random.PRNGKey(0)
    pkey, xkey = jax.random.split(key)
    params = init_params(pkey)
    # batch=2, MNIST-style 1x28x28 input (required so the flatten yields 320)
    x = jax.random.normal(xkey, (2, 1, 28, 28), jnp.float32)

    out = jax.block_until_ready(jax.jit(net_forward)(x, params))
    assert out.shape == (2, 10), out.shape

    ref = jax.block_until_ready(jax.jit(ref_forward)(x, params))
    np.testing.assert_allclose(np.asarray(out), np.asarray(ref),
                               rtol=2e-4, atol=2e-4)
    print("KERNEL_OK")
</pallas_src>

<mosaic_0001>
module attributes {stable_mosaic.version = 11 : i64} {
  func.func @_net_kernel(%arg0: i32, %arg1: memref<1x128x400xf32, #tpu.memory_space<vmem>>, %arg2: memref<400x160xf32, #tpu.memory_space<vmem>>, %arg3: memref<1x160xf32, #tpu.memory_space<vmem>>, %arg4: memref<5x160x160xf32, #tpu.memory_space<vmem>>, %arg5: memref<1x160xf32, #tpu.memory_space<vmem>>, %arg6: memref<560x50xf32, #tpu.memory_space<vmem>>, %arg7: memref<1x50xf32, #tpu.memory_space<vmem>>, %arg8: memref<50x10xf32, #tpu.memory_space<vmem>>, %arg9: memref<1x10xf32, #tpu.memory_space<vmem>>, %arg10: memref<2x10xf32, #tpu.memory_space<vmem>>, %arg11: memref<32x160xf32, #tpu.memory_space<vmem>>) attributes {dimension_semantics = [#tpu.dimension_semantics<parallel>], iteration_bounds = array<i64: 1>, scalar_prefetch = 0 : i64, scratch_operands = 1 : i64, tpu.core_type = #tpu.core_type<tc>, window_params = [{transform_indices = @transform_0, window_bounds = array<i64: 1, 128, 400>}, {pipeline_mode = #tpu.pipeline_mode<synchronous>, transform_indices = @transform_1, window_bounds = array<i64: 400, 160>}, {pipeline_mode = #tpu.pipeline_mode<synchronous>, transform_indices = @transform_2, window_bounds = array<i64: 1, 160>}, {pipeline_mode = #tpu.pipeline_mode<synchronous>, transform_indices = @transform_3, window_bounds = array<i64: 5, 160, 160>}, {pipeline_mode = #tpu.pipeline_mode<synchronous>, transform_indices = @transform_4, window_bounds = array<i64: 1, 160>}, {pipeline_mode = #tpu.pipeline_mode<synchronous>, transform_indices = @transform_5, window_bounds = array<i64: 560, 50>}, {pipeline_mode = #tpu.pipeline_mode<synchronous>, transform_indices = @transform_6, window_bounds = array<i64: 1, 50>}, {pipeline_mode = #tpu.pipeline_mode<synchronous>, transform_indices = @transform_7, window_bounds = array<i64: 50, 10>}, {pipeline_mode = #tpu.pipeline_mode<synchronous>, transform_indices = @transform_8, window_bounds = array<i64: 1, 10>}, {transform_indices = @transform_9, window_bounds = array<i64: 2, 10>}]} {
    %c0 = arith.constant 0 : index
    %c0_0 = arith.constant 0 : index
    %c0_1 = arith.constant 0 : index
    %0 = vector.load %arg1[%c0, %c0_0, %c0_1] : memref<1x128x400xf32, #tpu.memory_space<vmem>>, vector<1x128x400xf32>
    %1 = vector.shape_cast %0 : vector<1x128x400xf32> to vector<128x400xf32>
    %c0_2 = arith.constant 0 : index
    %c0_3 = arith.constant 0 : index
    %2 = vector.load %arg2[%c0_2, %c0_3] : memref<400x160xf32, #tpu.memory_space<vmem>>, vector<400x160xf32>
    %cst = arith.constant dense<0.000000e+00> : vector<128x160xf32>
    %3 = tpu.matmul %1, %2, %cst {dimension_numbers = #tpu.dot_dimension_numbers<[1], [0], [0], [1], [0, 0, 1, 1], [], []>} : vector<128x400xf32>, vector<400x160xf32>, vector<128x160xf32> -> vector<128x160xf32>
    %c0_4 = arith.constant 0 : index
    %c0_5 = arith.constant 0 : index
    %4 = vector.load %arg3[%c0_4, %c0_5] : memref<1x160xf32, #tpu.memory_space<vmem>>, vector<1x160xf32>
    %5 = vector.broadcast %4 : vector<1x160xf32> to vector<128x160xf32>
    %6 = arith.addf %3, %5 : vector<128x160xf32>
    %7 = vector.extract_strided_slice %6 {offsets = [0, 0], sizes = [32, 160], strides = [1, 1]} : vector<128x160xf32> to vector<32x160xf32>
    %8 = vector.extract_strided_slice %6 {offsets = [32, 0], sizes = [32, 160], strides = [1, 1]} : vector<128x160xf32> to vector<32x160xf32>
    %9 = arith.maximumf %7, %8 : vector<32x160xf32>
    %10 = vector.extract_strided_slice %6 {offsets = [64, 0], sizes = [32, 160], strides = [1, 1]} : vector<128x160xf32> to vector<32x160xf32>
    %11 = vector.extract_strided_slice %6 {offsets = [96, 0], sizes = [32, 160], strides = [1, 1]} : vector<128x160xf32> to vector<32x160xf32>
    %12 = arith.maximumf %10, %11 : vector<32x160xf32>
    %13 = arith.maximumf %9, %12 : vector<32x160xf32>
    %cst_6 = arith.constant 0.000000e+00 : f32
    %14 = vector.broadcast %cst_6 : f32 to vector<32x160xf32>
    %15 = arith.maximumf %13, %14 : vector<32x160xf32>
    %c0_7 = arith.constant 0 : index
    %c0_8 = arith.constant 0 : index
    %16 = vector.load %arg11[%c0_7, %c0_8] : memref<32x160xf32, #tpu.memory_space<vmem>>, vector<32x160xf32>
    tpu.vector_store %arg11[%c0_7, %c0_8], %15 {strides = array<i32>} : memref<32x160xf32, #tpu.memory_space<vmem>>, vector<32x160xf32>,
    %cst_9 = arith.constant 0.000000e+00 : f32
    %17 = vector.broadcast %cst_9 : f32 to vector<24x160xf32>
    %c0_10 = arith.constant 0 : index
    %c0_11 = arith.constant 0 : index
    %18 = vector.load %arg11[%c0_10, %c0_11] : memref<32x160xf32, #tpu.memory_space<vmem>>, vector<24x160xf32>
    %c0_12 = arith.constant 0 : index
    %c0_13 = arith.constant 0 : index
    %c0_14 = arith.constant 0 : index
    %19 = vector.load %arg4[%c0_12, %c0_13, %c0_14] : memref<5x160x160xf32, #tpu.memory_space<vmem>>, vector<1x160x160xf32>
    %20 = vector.shape_cast %19 : vector<1x160x160xf32> to vector<160x160xf32>
    %cst_15 = arith.constant dense<0.000000e+00> : vector<24x160xf32>
    %21 = tpu.matmul %18, %20, %cst_15 {dimension_numbers = #tpu.dot_dimension_numbers<[1], [0], [0], [1], [0, 0, 1, 1], [], []>} : vector<24x160xf32>, vector<160x160xf32>, vector<24x160xf32> -> vector<24x160xf32>
    %22 = arith.addf %17, %21 : vector<24x160xf32>
    %c2 = arith.constant 2 : index
    %c0_16 = arith.constant 0 : index
    %23 = vector.load %arg11[%c2, %c0_16] : memref<32x160xf32, #tpu.memory_space<vmem>>, vector<24x160xf32>
    %c1 = arith.constant 1 : index
    %c0_17 = arith.constant 0 : index
    %c0_18 = arith.constant 0 : index
    %24 = vector.load %arg4[%c1, %c0_17, %c0_18] : memref<5x160x160xf32, #tpu.memory_space<vmem>>, vector<1x160x160xf32>
    %25 = vector.shape_cast %24 : vector<1x160x160xf32> to vector<160x160xf32>
    %cst_19 = arith.constant dense<0.000000e+00> : vector<24x160xf32>
    %26 = tpu.matmul %23, %25, %cst_19 {dimension_numbers = #tpu.dot_dimension_numbers<[1], [0], [0], [1], [0, 0, 1, 1], [], []>} : vector<24x160xf32>, vector<160x160xf32>, vector<24x160xf32> -> vector<24x160xf32>
    %27 = arith.addf %22, %26 : vector<24x160xf32>
    %c4 = arith.constant 4 : index
    %c0_20 = arith.constant 0 : index
    %28 = vector.load %arg11[%c4, %c0_20] : memref<32x160xf32, #tpu.memory_space<vmem>>, vector<24x160xf32>
    %c2_21 = arith.constant 2 : index
    %c0_22 = arith.constant 0 : index
    %c0_23 = arith.constant 0 : index
    %29 = vector.load %arg4[%c2_21, %c0_22, %c0_23] : memref<5x160x160xf32, #tpu.memory_space<vmem>>, vector<1x160x160xf32>
    %30 = vector.shape_cast %29 : vector<1x160x160xf32> to vector<160x160xf32>
    %cst_24 = arith.constant dense<0.000000e+00> : vector<24x160xf32>
    %31 = tpu.matmul %28, %30, %cst_24 {dimension_numbers = #tpu.dot_dimension_numbers<[1], [0], [0], [1], [0, 0, 1, 1], [], []>} : vector<24x160xf32>, vector<160x160xf32>, vector<24x160xf32> -> vector<24x160xf32>
    %32 = arith.addf %27, %31 : vector<24x160xf32>
    %c6 = arith.constant 6 : index
    %c0_25 = arith.constant 0 : index
    %33 = vector.load %arg11[%c6, %c0_25] : memref<32x160xf32, #tpu.memory_space<vmem>>, vector<24x160xf32>
    %c3 = arith.constant 3 : index
    %c0_26 = arith.constant 0 : index
    %c0_27 = arith.constant 0 : index
    %34 = vector.load %arg4[%c3, %c0_26, %c0_27] : memref<5x160x160xf32, #tpu.memory_space<vmem>>, vector<1x160x160xf32>
    %35 = vector.shape_cast %34 : vector<1x160x160xf32> to vector<160x160xf32>
    %cst_28 = arith.constant dense<0.000000e+00> : vector<24x160xf32>
    %36 = tpu.matmul %33, %35, %cst_28 {dimension_numbers = #tpu.dot_dimension_numbers<[1], [0], [0], [1], [0, 0, 1, 1], [], []>} : vector<24x160xf32>, vector<160x160xf32>, vector<24x160xf32> -> vector<24x160xf32>
    %37 = arith.addf %32, %36 : vector<24x160xf32>
    %c8 = arith.constant 8 : index
    %c0_29 = arith.constant 0 : index
    %38 = vector.load %arg11[%c8, %c0_29] : memref<32x160xf32, #tpu.memory_space<vmem>>, vector<24x160xf32>
    %c4_30 = arith.constant 4 : index
    %c0_31 = arith.constant 0 : index
    %c0_32 = arith.constant 0 : index
    %39 = vector.load %arg4[%c4_30, %c0_31, %c0_32] : memref<5x160x160xf32, #tpu.memory_space<vmem>>, vector<1x160x160xf32>
    %40 = vector.shape_cast %39 : vector<1x160x160xf32> to vector<160x160xf32>
    %cst_33 = arith.constant dense<0.000000e+00> : vector<24x160xf32>
    %41 = tpu.matmul %38, %40, %cst_33 {dimension_numbers = #tpu.dot_dimension_numbers<[1], [0], [0], [1], [0, 0, 1, 1], [], []>} : vector<24x160xf32>, vector<160x160xf32>, vector<24x160xf32> -> vector<24x160xf32>
    %42 = arith.addf %37, %41 : vector<24x160xf32>
    %c0_34 = arith.constant 0 : index
    %c0_35 = arith.constant 0 : index
    %43 = vector.load %arg5[%c0_34, %c0_35] : memref<1x160xf32, #tpu.memory_space<vmem>>, vector<1x160xf32>
    %44 = vector.broadcast %43 : vector<1x160xf32> to vector<24x160xf32>
    %45 = arith.addf %42, %44 : vector<24x160xf32>
    %46 = vector.extract_strided_slice %45 {offsets = [0, 0], sizes = [24, 140], strides = [1, 1]} : vector<24x160xf32> to vector<24x140xf32>
    %47 = vector.extract_strided_slice %45 {offsets = [0, 20], sizes = [24, 140], strides = [1, 1]} : vector<24x160xf32> to vector<24x140xf32>
    %48 = arith.maximumf %46, %47 : vector<24x140xf32>
    %49 = vector.extract_strided_slice %48 {offsets = [0, 0], sizes = [2, 140], strides = [1, 1]} : vector<24x140xf32> to vector<2x140xf32>
    %50 = vector.extract_strided_slice %48 {offsets = [2, 0], sizes = [2, 140], strides = [1, 1]} : vector<24x140xf32> to vector<2x140xf32>
    %51 = arith.maximumf %49, %50 : vector<2x140xf32>
    %52 = vector.extract_strided_slice %48 {offsets = [4, 0], sizes = [2, 140], strides = [1, 1]} : vector<24x140xf32> to vector<2x140xf32>
    %53 = vector.extract_strided_slice %48 {offsets = [6, 0], sizes = [2, 140], strides = [1, 1]} : vector<24x140xf32> to vector<2x140xf32>
    %54 = arith.maximumf %52, %53 : vector<2x140xf32>
    %55 = vector.extract_strided_slice %48 {offsets = [8, 0], sizes = [2, 140], strides = [1, 1]} : vector<24x140xf32> to vector<2x140xf32>
    %56 = vector.extract_strided_slice %48 {offsets = [10, 0], sizes = [2, 140], strides = [1, 1]} : vector<24x140xf32> to vector<2x140xf32>
    %57 = arith.maximumf %55, %56 : vector<2x140xf32>
    %58 = vector.extract_strided_slice %48 {offsets = [12, 0], sizes = [2, 140], strides = [1, 1]} : vector<24x140xf32> to vector<2x140xf32>
    %59 = vector.extract_strided_slice %48 {offsets = [14, 0], sizes = [2, 140], strides = [1, 1]} : vector<24x140xf32> to vector<2x140xf32>
    %60 = arith.maximumf %58, %59 : vector<2x140xf32>
    %61 = tpu.concatenate %51, %54, %57, %60 in 1 : vector<2x140xf32>, vector<2x140xf32>, vector<2x140xf32>, vector<2x140xf32> -> vector<2x560xf32>
    %cst_36 = arith.constant 0.000000e+00 : f32
    %62 = vector.broadcast %cst_36 : f32 to vector<2x560xf32>
    %63 = arith.maximumf %61, %62 : vector<2x560xf32>
    %c0_37 = arith.constant 0 : index
    %c0_38 = arith.constant 0 : index
    %64 = vector.load %arg6[%c0_37, %c0_38] : memref<560x50xf32, #tpu.memory_space<vmem>>, vector<560x50xf32>
    %cst_39 = arith.constant dense<0.000000e+00> : vector<2x50xf32>
    %65 = tpu.matmul %63, %64, %cst_39 {dimension_numbers = #tpu.dot_dimension_numbers<[1], [0], [0], [1], [0, 0, 1, 1], [], []>} : vector<2x560xf32>, vector<560x50xf32>, vector<2x50xf32> -> vector<2x50xf32>
    %c0_40 = arith.constant 0 : index
    %c0_41 = arith.constant 0 : index
    %66 = vector.load %arg7[%c0_40, %c0_41] : memref<1x50xf32, #tpu.memory_space<vmem>>, vector<1x50xf32>
    %67 = vector.broadcast %66 : vector<1x50xf32> to vector<2x50xf32>
    %68 = arith.addf %65, %67 : vector<2x50xf32>
    %cst_42 = arith.constant 0.000000e+00 : f32
    %69 = vector.broadcast %cst_42 : f32 to vector<2x50xf32>
    %70 = arith.maximumf %68, %69 : vector<2x50xf32>
    %c0_43 = arith.constant 0 : index
    %c0_44 = arith.constant 0 : index
    %71 = vector.load %arg8[%c0_43, %c0_44] : memref<50x10xf32, #tpu.memory_space<vmem>>, vector<50x10xf32>
    %cst_45 = arith.constant dense<0.000000e+00> : vector<2x10xf32>
    %72 = tpu.matmul %70, %71, %cst_45 {dimension_numbers = #tpu.dot_dimension_numbers<[1], [0], [0], [1], [0, 0, 1, 1], [], []>} : vector<2x50xf32>, vector<50x10xf32>, vector<2x10xf32> -> vector<2x10xf32>
    %c0_46 = arith.constant 0 : index
    %c0_47 = arith.constant 0 : index
    %73 = vector.load %arg9[%c0_46, %c0_47] : memref<1x10xf32, #tpu.memory_space<vmem>>, vector<1x10xf32>
    %74 = vector.broadcast %73 : vector<1x10xf32> to vector<2x10xf32>
    %75 = arith.addf %72, %74 : vector<2x10xf32>
    %cst_48 = arith.constant dense<0xFF800000> : vector<2xf32>
    %76 = vector.multi_reduction <maximumf>, %75, %cst_48 [1] : vector<2x10xf32> to vector<2xf32>
    %77 = vector.shape_cast %76 : vector<2xf32> to vector<2x1xf32>
    %78 = vector.broadcast %77 : vector<2x1xf32> to vector<2x10xf32>
    %79 = arith.subf %75, %78 : vector<2x10xf32>
    %80 = math.exp %79 : vector<2x10xf32>
    %cst_49 = arith.constant dense<0.000000e+00> : vector<2xf32>
    %81 = vector.multi_reduction <add>, %80, %cst_49 [1] : vector<2x10xf32> to vector<2xf32>
    %82 = vector.shape_cast %81 : vector<2xf32> to vector<2x1xf32>
    %83 = math.log %82 : vector<2x1xf32>
    %84 = vector.broadcast %83 : vector<2x1xf32> to vector<2x10xf32>
    %85 = arith.subf %79, %84 : vector<2x10xf32>
    %c0_50 = arith.constant 0 : index
    %c0_51 = arith.constant 0 : index
    %86 = vector.load %arg10[%c0_50, %c0_51] : memref<2x10xf32, #tpu.memory_space<vmem>>, vector<2x10xf32>
    tpu.vector_store %arg10[%c0_50, %c0_51], %85 {strides = array<i32>} : memref<2x10xf32, #tpu.memory_space<vmem>>, vector<2x10xf32>,
    return
  }
  func.func @transform_0(%arg0: i32) -> (i32, i32, i32) {
    %c0_i32 = arith.constant 0 : i32
    %c0_i32_0 = arith.constant 0 : i32
    %c0_i32_1 = arith.constant 0 : i32
    return %arg0, %c0_i32, %c0_i32_0 : i32, i32, i32
  }
  func.func @transform_1(%arg0: i32) -> (i32, i32) {
    %c0_i32 = arith.constant 0 : i32
    %c0_i32_0 = arith.constant 0 : i32
    %c0_i32_1 = arith.constant 0 : i32
    return %c0_i32, %c0_i32_0 : i32, i32
  }
  func.func @transform_2(%arg0: i32) -> (i32, i32) {
    %c0_i32 = arith.constant 0 : i32
    %c0_i32_0 = arith.constant 0 : i32
    %c0_i32_1 = arith.constant 0 : i32
    return %c0_i32, %c0_i32_0 : i32, i32
  }
  func.func @transform_3(%arg0: i32) -> (i32, i32, i32) {
    %c0_i32 = arith.constant 0 : i32
    %c0_i32_0 = arith.constant 0 : i32
    %c0_i32_1 = arith.constant 0 : i32
    %c0_i32_2 = arith.constant 0 : i32
    return %c0_i32, %c0_i32_0, %c0_i32_1 : i32, i32, i32
  }
  func.func @transform_4(%arg0: i32) -> (i32, i32) {
    %c0_i32 = arith.constant 0 : i32
    %c0_i32_0 = arith.constant 0 : i32
    %c0_i32_1 = arith.constant 0 : i32
    return %c0_i32, %c0_i32_0 : i32, i32
  }
  func.func @transform_5(%arg0: i32) -> (i32, i32) {
    %c0_i32 = arith.constant 0 : i32
    %c0_i32_0 = arith.constant 0 : i32
    %c0_i32_1 = arith.constant 0 : i32
    return %c0_i32, %c0_i32_0 : i32, i32
  }
  func.func @transform_6(%arg0: i32) -> (i32, i32) {
    %c0_i32 = arith.constant 0 : i32
    %c0_i32_0 = arith.constant 0 : i32
    %c0_i32_1 = arith.constant 0 : i32
    return %c0_i32, %c0_i32_0 : i32, i32
  }
  func.func @transform_7(%arg0: i32) -> (i32, i32) {
    %c0_i32 = arith.constant 0 : i32
    %c0_i32_0 = arith.constant 0 : i32
    %c0_i32_1 = arith.constant 0 : i32
    return %c0_i32, %c0_i32_0 : i32, i32
  }
  func.func @transform_8(%arg0: i32) -> (i32, i32) {
    %c0_i32 = arith.constant 0 : i32
    %c0_i32_0 = arith.constant 0 : i32
    %c0_i32_1 = arith.constant 0 : i32
    return %c0_i32, %c0_i32_0 : i32, i32
  }
  func.func @transform_9(%arg0: i32) -> (i32, i32) {
    %c0_i32 = arith.constant 0 : i32
    %c0_i32_0 = arith.constant 0 : i32
    return %arg0, %c0_i32 : i32, i32
  }
}

</mosaic_0001>

<bundles_post_ra>
// kernel: tile.13
= control target key start
LH: loop header
LB: loop body
LE: loop exit
PB: predicated region body
PF: predicated region fallthrough
CT: control target
= control target key end

     0   :  { %s28_s0 = inlined_call_operand.vmem [shape: f32[10], index: 0, kind: input, shape index: {}]   ;;  %s29_s1 = inlined_call_operand.vmem [shape: f32[16,10], index: 1, kind: output, shape index: {}]  }
   0x1   :  { %v4_v0 = vld [vmem:[%s28_s0] ss:$0 sm:$0xff] }
   0x2   :  { %5 = vst [vmem:[%s29_s1] sm:$0xff] %v4_v0  ;;  %8 = vst [vmem:[%s29_s1 + $0x8] sm:$0xff] %v4_v0 }

// kernel: tile.14
= control target key start
LH: loop header
LB: loop body
LE: loop exit
PB: predicated region body
PF: predicated region fallthrough
CT: control target
= control target key end

     0   :  { %vm9_vm0 = vcmask 64512   ;;  %s148_s12 = smov 120   ;;  %s149_s13 = smov 100   ;;  %vm3_vm1 = vcmask 80896   ;;  %vm13_vm2 = vcmask 15360   ;;  %vm16_vm3 = vcmask 1048512   ;;  %s230_s0 = inlined_call_operand.vmem [shape: f32[16,10], index: 0, kind: input, shape index: {}]   ;;  %s231_s1 = inlined_call_operand.vmem [shape: f32[1,160], index: 1, kind: output, shape index: {}]  }
   0x1   :  { %v116_v0 = vld [vmem:[%s230_s0 + $0xc] sm:$0x1]   ;;  %v119_v3 = vld [vmem:[%s230_s0 + $0xa] sm:$0x1]   ;;  %v118_v4 = vld [vmem:[%s230_s0 + $0xb] sm:$0x1]  }
   0x2   :  { %v117_v1 = vld [vmem:[%s230_s0 + $0xc] sm:$0x1]   ;;  %26 = vrot.lane.b32.xlu1 %v119_v3, %s149_s13  ;;  %v120_v5 = vld [vmem:[%s230_s0 + $0x9] sm:$0x1]   ;;  %s150_s18 = smov 110   ;;  %s151_s19 = smov 90  }
   0x3   :  { %v10_v2 = vsel %vm9_vm0, %v117_v1, %v116_v0  ;;  %v121_v6 = vld [vmem:[%s230_s0 + $0x8] sm:$0x1]   ;;  %v122_v7 = vld [vmem:[%s230_s0 + $0x7] sm:$0x1]   ;;  %v2_v8 = vld [vmem:[%s230_s0] sm:$0x1]  }
   0x4   :  { %11 = vrot.lane.b32.xlu0 %v10_v2, %s148_s12  ;;  %4 = vst.msk [vmem:[#allocation0] sm:$0x1] %vm3_vm1, %v2_v8   ;;  %s152_s26 = smov 80   ;;  %s153_s27 = smov 70   ;;  %v123_v9 = vld [vmem:[%s230_s0 + $0x6] sm:$0x1]  }
   0x5   :  { %v124_v10 = vld [vmem:[%s230_s0 + $0x5] sm:$0x1]   ;;  %s154_s3 = smov 60   ;;  %s155_s4 = smov 50   ;;  %v125_v11 = vld [vmem:[%s230_s0 + $0x4] sm:$0x1]  }
   0x6   :  { %32 = vrot.lane.b32.xlu1 %v120_v5, %s151_s19  ;;  %v126_v12 = vld [vmem:[%s230_s0 + $0x3] sm:$0x1]   ;;  %s156_s9 = smov 40   ;;  %s157_s10 = smov 30   ;;  %v127_v13 = vld [vmem:[%s230_s0 + $0xf] sm:$0x1]  }
   0x7   :  { %v128_v14 = vld [vmem:[%s230_s0 + $0x2] sm:$0x1]   ;;  %s158_s15 = smov 22   ;;  %s159_s16 = smov 20   ;;  %v129_v15 = vld [vmem:[%s230_s0 + $0xe] sm:$0x1]  }
   0x8   :  { %20 = vrot.lane.b32.xlu0 %v118_v4, %s150_s18  ;;  %v130_v16 = vld [vmem:[%s230_s0 + $0x1] sm:$0x1]   ;;  %s160_s21 = smov 12   ;;  %s161_s22 = smov 10   ;;  %v131_v17 = vld [vmem:[%s230_s0 + $0xd] sm:$0x1]  }
   0x9   :  { %s162_s0 = smov 2   ;;  %vm22_vm4 = vcmask 982896   ;;  %vm28_vm5 = vcmask 900896   ;;  %vm34_vm6 = vcmask 818896   ;;  %vm40_vm7 = vcmask 736896  }
   0xa   :  { %44 = vrot.lane.b32.xlu1 %v122_v7, %s153_s27  ;;  %vm46_vm8 = vcmask 654896   ;;  %vm52_vm9 = vcmask 572896   ;;  %vm58_vm10 = vcmask 490896   ;;  %vm64_vm11 = vcmask 408896  }
   0xb   :  { %vm70_vm12 = vcmask 326896   ;;  %vm76_vm13 = vcmask 261296   ;;  %vm83_vm14 = vcmask 244896   ;;  %vm89_vm15 = vcmask 179296  }
   0xc   :  { %38 = vrot.lane.b32.xlu0 %v121_v6, %s152_s26  ;;  %vm96_vm0 = vcmask 162896   ;;  %vm102_vm1 = vcmask 97296  }
   0xe   :  { %56 = vrot.lane.b32.xlu1 %v124_v10, %s155_s4 }
  0x10   :  { %50 = vrot.lane.b32.xlu0 %v123_v9, %s154_s3 }
  0x12   :  { %68 = vrot.lane.b32.xlu1 %v126_v12, %s157_s10 }
  0x14   :  { %62 = vrot.lane.b32.xlu0 %v125_v11, %s156_s9 }
  0x16   :  { %81 = vrot.lane.b32.xlu1 %v128_v14, %s159_s16 }
  0x18   :  { %74 = vrot.lane.b32.xlu0 %v127_v13, %s158_s15 }
  0x1a   :  { %94 = vrot.lane.b32.xlu1 %v130_v16, %s161_s22 }
  0x1c   :  { %87 = vrot.lane.b32.xlu0 %v129_v15, %s160_s21 }
  0x20   :  { %100 = vrot.lane.b32.xlu0 %v131_v17, %s162_s0 }
  0x74   :  { %v27_v19 = vpop.permute.xlu1 %26  }
  0x76   :  { %v12_v18 = vpop.permute.xlu0 %11  }
  0x77   :  { %15 = vst.msk [vmem:[#allocation0 + $0x8] sm:$0x1] %vm13_vm2, %v12_v18  }
  0x78   :  { %17 = vst.msk [vmem:[#allocation0] sm:$0x1] %vm16_vm3, %v12_v18   ;;  %v33_v21 = vpop.permute.xlu1 %32  }
  0x7a   :  { %v21_v20 = vpop.permute.xlu0 %20  }
  0x7b   :  { %23 = vst.msk [vmem:[#allocation0] sm:$0x1] %vm22_vm4, %v21_v20  }
  0x7c   :  { %29 = vst.msk [vmem:[#allocation0] sm:$0x1] %vm28_vm5, %v27_v19   ;;  %v45_v23 = vpop.permute.xlu1 %44  }
  0x7d   :  { %35 = vst.msk [vmem:[#allocation0] sm:$0x1] %vm34_vm6, %v33_v21  }
  0x7e   :  { %v39_v22 = vpop.permute.xlu0 %38  }
  0x7f   :  { %41 = vst.msk [vmem:[#allocation0] sm:$0x1] %vm40_vm7, %v39_v22  }
  0x80   :  { %47 = vst.msk [vmem:[#allocation0] sm:$0x1] %vm46_vm8, %v45_v23   ;;  %v57_v25 = vpop.permute.xlu1 %56  }
  0x82   :  { %v51_v24 = vpop.permute.xlu0 %50  }
  0x83   :  { %53 = vst.msk [vmem:[#allocation0] sm:$0x1] %vm52_vm9, %v51_v24  }
  0x84   :  { %59 = vst.msk [vmem:[#allocation0] sm:$0x1] %vm58_vm10, %v57_v25   ;;  %v69_v27 = vpop.permute.xlu1 %68  }
  0x86   :  { %v63_v26 = vpop.permute.xlu0 %62  }
  0x87   :  { %65 = vst.msk [vmem:[#allocation0] sm:$0x1] %vm64_vm11, %v63_v26  }
  0x88   :  { %71 = vst.msk [vmem:[#allocation0] sm:$0x1] %vm70_vm12, %v69_v27   ;;  %v82_v29 = vpop.permute.xlu1 %81  }
  0x89   :  { %84 = vst.msk [vmem:[#allocation0] sm:$0x1] %vm83_vm14, %v82_v29  }
  0x8a   :  { %v75_v28 = vpop.permute.xlu0 %74  }
  0x8b   :  { %78 = vst.msk [vmem:[#allocation0 + $0x8] sm:$0x1] %vm76_vm13, %v75_v28  }
  0x8c   :  { %v95_v31 = vpop.permute.xlu1 %94  }
  0x8d   :  { %97 = vst.msk [vmem:[#allocation0] sm:$0x1] %vm96_vm0, %v95_v31  }
  0x8e   :  { %v88_v30 = vpop.permute.xlu0 %87  }
  0x8f   :  { %91 = vst.msk [vmem:[#allocation0 + $0x8] sm:$0x1] %vm89_vm15, %v88_v30  }
  0x92   :  { %v101_v32 = vpop.permute.xlu0 %100  }
  0x93   :  { %104 = vst.msk [vmem:[#allocation0 + $0x8] sm:$0x1] %vm102_vm1, %v101_v32  }
  0x94   :  { %v108_v33 = vld [vmem:[#allocation0] sm:$0x1] }
  0x95   :  { %110 = vst [vmem:[%s231_s1] sm:$0x1] %v108_v33 }
  0x9a   :  { %v112_v34 = vld [vmem:[#allocation0 + $0x8] sm:$0x1] }
  0x9b   :  { %132 = vst [vmem:[%s231_s1 + $0x1] sm:$0x1] %v112_v34 }

// kernel: tile.18
= control target key start
LH: loop header
LB: loop body
LE: loop exit
PB: predicated region body
PF: predicated region fallthrough
CT: control target
= control target key end

     0   :  { %s22_s0 = inlined_call_operand.vmem [shape: f32[20], index: 0, kind: input, shape index: {}]   ;;  %s23_s1 = inlined_call_operand.vmem [shape: f32[8,20], index: 1, kind: output, shape index: {}]  }
   0x1   :  { %v4_v0 = vld [vmem:[%s22_s0] ss:$0 sm:$0xff] }
   0x2   :  { %5 = vst [vmem:[%s23_s1] sm:$0xff] %v4_v0 }

// kernel: tile.19
= control target key start
LH: loop header
LB: loop body
LE: loop exit
PB: predicated region body
PF: predicated region fallthrough
CT: control target
= control target key end

     0   :  { %vm9_vm0 = vcmask 64512   ;;  %s82_s12 = smov 120   ;;  %s83_s13 = smov 80   ;;  %vm3_vm1 = vcmask 162816   ;;  %vm13_vm2 = vcmask 97280   ;;  %vm16_vm3 = vcmask 1048512   ;;  %s132_s0 = inlined_call_operand.vmem [shape: f32[8,20], index: 0, kind: input, shape index: {}]   ;;  %s133_s1 = inlined_call_operand.vmem [shape: f32[1,160], index: 1, kind: output, shape index: {}]  }
   0x1   :  { %v66_v0 = vld [vmem:[%s132_s0 + $0x6] sm:$0x1]   ;;  %v69_v3 = vld [vmem:[%s132_s0 + $0x4] sm:$0x1]   ;;  %v68_v4 = vld [vmem:[%s132_s0 + $0x5] sm:$0x1]  }
   0x2   :  { %v67_v1 = vld [vmem:[%s132_s0 + $0x6] sm:$0x1]   ;;  %26 = vrot.lane.b32.xlu1 %v69_v3, %s83_s13  ;;  %v70_v5 = vld [vmem:[%s132_s0 + $0x3] sm:$0x1]   ;;  %v2_v6 = vld [vmem:[%s132_s0] sm:$0x1]  }
   0x3   :  { %v10_v2 = vsel %vm9_vm0, %v67_v1, %v66_v0  ;;  %4 = vst.msk [vmem:[#allocation0] sm:$0x1] %vm3_vm1, %v2_v6   ;;  %s84_s20 = smov 100   ;;  %s85_s21 = smov 60   ;;  %v71_v7 = vld [vmem:[%s132_s0 + $0x2] sm:$0x1]  }
   0x4   :  { %11 = vrot.lane.b32.xlu0 %v10_v2, %s82_s12  ;;  %v72_v8 = vld [vmem:[%s132_s0 + $0x1] sm:$0x1]   ;;  %s86_s26 = smov 40   ;;  %s87_s27 = smov 20   ;;  %v73_v9 = vld [vmem:[%s132_s0 + $0x7] sm:$0x1]  }
   0x5   :  { %s88_s0 = smov 12   ;;  %vm22_vm4 = vcmask 982816   ;;  %vm28_vm5 = vcmask 818816   ;;  %vm34_vm6 = vcmask 654816   ;;  %vm40_vm7 = vcmask 490816  }
   0x6   :  { %32 = vrot.lane.b32.xlu1 %v70_v5, %s85_s21  ;;  %vm46_vm8 = vcmask 326816   ;;  %vm52_vm9 = vcmask 261216  }
   0x8   :  { %20 = vrot.lane.b32.xlu0 %v68_v4, %s84_s20 }
   0xa   :  { %44 = vrot.lane.b32.xlu1 %v72_v8, %s87_s27 }
   0xc   :  { %38 = vrot.lane.b32.xlu0 %v71_v7, %s86_s26 }
  0x10   :  { %50 = vrot.lane.b32.xlu0 %v73_v9, %s88_s0 }
  0x74   :  { %v27_v11 = vpop.permute.xlu1 %26  }
  0x76   :  { %v12_v10 = vpop.permute.xlu0 %11  }
  0x77   :  { %15 = vst.msk [vmem:[#allocation0 + $0x8] sm:$0x1] %vm13_vm2, %v12_v10  }
  0x78   :  { %17 = vst.msk [vmem:[#allocation0] sm:$0x1] %vm16_vm3, %v12_v10   ;;  %v33_v13 = vpop.permute.xlu1 %32  }
  0x7a   :  { %v21_v12 = vpop.permute.xlu0 %20  }
  0x7b   :  { %23 = vst.msk [vmem:[#allocation0] sm:$0x1] %vm22_vm4, %v21_v12  }
  0x7c   :  { %29 = vst.msk [vmem:[#allocation0] sm:$0x1] %vm28_vm5, %v27_v11   ;;  %v45_v15 = vpop.permute.xlu1 %44  }
  0x7d   :  { %35 = vst.msk [vmem:[#allocation0] sm:$0x1] %vm34_vm6, %v33_v13  }
  0x7e   :  { %v39_v14 = vpop.permute.xlu0 %38  }
  0x7f   :  { %41 = vst.msk [vmem:[#allocation0] sm:$0x1] %vm40_vm7, %v39_v14  }
  0x80   :  { %47 = vst.msk [vmem:[#allocation0] sm:$0x1] %vm46_vm8, %v45_v15  }
  0x82   :  { %v51_v16 = vpop.permute.xlu0 %50  }
  0x83   :  { %54 = vst.msk [vmem:[#allocation0 + $0x8] sm:$0x1] %vm52_vm9, %v51_v16  }
  0x87   :  { %v58_v17 = vld [vmem:[#allocation0] sm:$0x1] }
  0x88   :  { %60 = vst [vmem:[%s133_s1] sm:$0x1] %v58_v17 }
  0x8a   :  { %v62_v18 = vld [vmem:[#allocation0 + $0x8] sm:$0x1] }
  0x8b   :  { %74 = vst [vmem:[%s133_s1 + $0x1] sm:$0x1] %v62_v18 }

// kernel: net_forward.1
= control target key start
LH: loop header
LB: loop body
LE: loop exit
PB: predicated region body
PF: predicated region fallthrough
CT: control target
= control target key end

     0   :  { %s4309_s0 = inlined_call_operand.vmem [shape: f32[1,128,400], index: 0, kind: input, shape index: {}]   ;;  %s4310_s1 = inlined_call_operand.vmem [shape: f32[400,160], index: 1, kind: input, shape index: {}]   ;;  %s4311_s2 = inlined_call_operand.vmem [shape: f32[1,160], index: 2, kind: input, shape index: {}]   ;;  %s4312_s3 = inlined_call_operand.vmem [shape: f32[5,160,160], index: 3, kind: input, shape index: {}]   ;;  %s4313_s4 = inlined_call_operand.vmem [shape: f32[1,160], index: 4, kind: input, shape index: {}]   ;;  %s4314_s5 = inlined_call_operand.vmem [shape: f32[560,50], index: 5, kind: input, shape index: {}]   ;;  %s4315_s6 = inlined_call_operand.vmem [shape: f32[1,50], index: 6, kind: input, shape index: {}]   ;;  %s4316_s7 = inlined_call_operand.vmem [shape: f32[50,10], index: 7, kind: input, shape index: {}]   ;;  %s4317_s8 = inlined_call_operand.vmem [shape: f32[1,10], index: 8, kind: input, shape index: {}]   ;;  %s4318_s9 = inlined_call_operand.hbm [shape: f32[2,10], index: 9, kind: output, shape index: {}]  }
   0x1   :  { %v98_v0 = vld [vmem:[%s4310_s1 + $0x8] sm:$0xff]  ;;  %v100_v1 = vld [vmem:[%s4310_s1 + $0x18] sm:$0xff]  ;;  %v97_v2 = vld [vmem:[%s4310_s1] sm:$0xff] }
   0x2   :  { %v2179_v3 = vpack.c.bf16 %v100_v1, %v98_v0  ;;  %v99_v4 = vld [vmem:[%s4310_s1 + $0x10] sm:$0xff]  ;;  %v102_v5 = vld [vmem:[%s4310_s1 + $0x28] sm:$0xff]  ;;  %v104_v6 = vld [vmem:[%s4310_s1 + $0x38] sm:$0xff] }
   0x3   :  { %v2181_v7 = vpack.c.bf16 %v99_v4, %v97_v2  ;;  %v2183_v8 = vpack.c.bf16 %v104_v6, %v102_v5  ;;  %v101_v9 = vld [vmem:[%s4310_s1 + $0x20] sm:$0xff]  ;;  %v103_v10 = vld [vmem:[%s4310_s1 + $0x30] sm:$0xff]  ;;  %v106_v11 = vld [vmem:[%s4310_s1 + $0x48] sm:$0xff] }
   0x4   :  { %2180 = vmatprep.subr.bf16.mxu0 %v2179_v3  ;;  %v108_v12 = vld [vmem:[%s4310_s1 + $0x58] sm:$0xff]  ;;  %v2185_v13 = vpack.c.bf16 %v103_v10, %v101_v9  ;;  %v105_v15 = vld [vmem:[%s4310_s1 + $0x40] sm:$0xff]  ;;  %v107_v16 = vld [vmem:[%s4310_s1 + $0x50] sm:$0xff] }
   0x5   :  { %2182 = vmatpush1.bf16.msra.mxu0 %v2181_v7  ;;  %v2187_v14 = vpack.c.bf16 %v108_v12, %v106_v11  ;;  %v110_v17 = vld [vmem:[%s4310_s1 + $0x68] sm:$0xff]  ;;  %v112_v18 = vld [vmem:[%s4310_s1 + $0x78] sm:$0xff]  ;;  %v2189_v19 = vpack.c.bf16 %v107_v16, %v105_v15  ;;  %v109_v21 = vld [vmem:[%s4310_s1 + $0x60] sm:$0xff] }
   0x6   :  { %2184 = vmatprep.subr.bf16.mxu0 %v2183_v8  ;;  %v2191_v20 = vpack.c.bf16 %v112_v18, %v110_v17  ;;  %v111_v22 = vld [vmem:[%s4310_s1 + $0x70] sm:$0xff]  ;;  %v114_v23 = vld [vmem:[%s4310_s1 + $0x88] sm:$0xff]  ;;  %v116_v24 = vld [vmem:[%s4310_s1 + $0x98] sm:$0xff] }
   0x7   :  { %v2193_v25 = vpack.c.bf16 %v111_v22, %v109_v21  ;;  %v2195_v26 = vpack.c.bf16 %v116_v24, %v114_v23  ;;  %v113_v27 = vld [vmem:[%s4310_s1 + $0x80] sm:$0xff]  ;;  %v115_v28 = vld [vmem:[%s4310_s1 + $0x90] sm:$0xff]  ;;  %v118_v29 = vld [vmem:[%s4310_s1 + $0xa8] sm:$0xff] }
   0x8   :  { %v120_v30 = vld [vmem:[%s4310_s1 + $0xb8] sm:$0xff]  ;;  %v2197_v31 = vpack.c.bf16 %v115_v28, %v113_v27  ;;  %v117_v33 = vld [vmem:[%s4310_s1 + $0xa0] sm:$0xff]  ;;  %v119_v34 = vld [vmem:[%s4310_s1 + $0xb0] sm:$0xff] }
   0x9   :  { %2186 = vmatpush1.bf16.msra.mxu0 %v2185_v13  ;;  %v2199_v32 = vpack.c.bf16 %v120_v30, %v118_v29  ;;  %v122_v35 = vld [vmem:[%s4310_s1 + $0xc8] sm:$0xff]  ;;  %v124_v36 = vld [vmem:[%s4310_s1 + $0xd8] sm:$0xff]  ;;  %v2201_v37 = vpack.c.bf16 %v119_v34, %v117_v33  ;;  %v121_v39 = vld [vmem:[%s4310_s1 + $0xc0] sm:$0xff] }
   0xa   :  { %2188 = vmatprep.subr.bf16.mxu0 %v2187_v14  ;;  %v2203_v38 = vpack.c.bf16 %v124_v36, %v122_v35  ;;  %v123_v40 = vld [vmem:[%s4310_s1 + $0xd0] sm:$0xff]  ;;  %v34_v41 = vld [vmem:[%s4309_s0 + $0x8] sm:$0xff]  ;;  %v128_v43 = vld [vmem:[%s4310_s1 + $0xf8] sm:$0xff] }
   0xb   :  { %v126_v42 = vld [vmem:[%s4310_s1 + $0xe8] sm:$0xff]  ;;  %322 = vmatprep.mubr.f32.mxu0 %v34_v41  ;;  %v2205_v44 = vpack.c.bf16 %v123_v40, %v121_v39  ;;  %v125_v46 = vld [vmem:[%s4310_s1 + $0xe0] sm:$0xff]  ;;  %v127_v47 = vld [vmem:[%s4310_s1 + $0xf0] sm:$0xff] }
   0xc   :  { %v2207_v45 = vpack.c.bf16 %v128_v43, %v126_v42  ;;  %v130_v48 = vld [vmem:[%s4310_s1 + $0x108] sm:$0xff]  ;;  %v132_v49 = vld [vmem:[%s4310_s1 + $0x118] sm:$0xff]  ;;  %v2209_v50 = vpack.c.bf16 %v127_v47, %v125_v46  ;;  %v129_v52 = vld [vmem:[%s4310_s1 + $0x100] sm:$0xff] }
   0xd   :  { %2190 = vmatpush1.bf16.msra.mxu0 %v2189_v19  ;;  %v2211_v51 = vpack.c.bf16 %v132_v49, %v130_v48  ;;  %v131_v53 = vld [vmem:[%s4310_s1 + $0x110] sm:$0xff]  ;;  %v134_v54 = vld [vmem:[%s4310_s1 + $0x128] sm:$0xff]  ;;  %v136_v55 = vld [vmem:[%s4310_s1 + $0x138] sm:$0xff] }
   0xe   :  { %2192 = vmatprep.subr.bf16.mxu0 %v2191_v20  ;;  %v2213_v56 = vpack.c.bf16 %v131_v53, %v129_v52  ;;  %v2215_v57 = vpack.c.bf16 %v136_v55, %v134_v54  ;;  %v133_v58 = vld [vmem:[%s4310_s1 + $0x120] sm:$0xff]  ;;  %v135_v59 = vld [vmem:[%s4310_s1 + $0x130] sm:$0xff]  ;;  %v138_v60 = vld [vmem:[%s4310_s1 + $0x148] sm:$0xff] }
   0xf   :  { %v140_v61 = vld [vmem:[%s4310_s1 + $0x158] sm:$0xff]  ;;  %v2217_v62 = vpack.c.bf16 %v135_v59, %v133_v58  ;;  %v137_v0 = vld [vmem:[%s4310_s1 + $0x140] sm:$0xff]  ;;  %v139_v1 = vld [vmem:[%s4310_s1 + $0x150] sm:$0xff] }
  0x10   :  { %v2219_v63 = vpack.c.bf16 %v140_v61, %v138_v60  ;;  %v142_v2 = vld [vmem:[%s4310_s1 + $0x168] sm:$0xff]  ;;  %v144_v3 = vld [vmem:[%s4310_s1 + $0x178] sm:$0xff]  ;;  %v2221_v4 = vpack.c.bf16 %v139_v1, %v137_v0  ;;  %v141_v6 = vld [vmem:[%s4310_s1 + $0x160] sm:$0xff] }
  0x11   :  { %2194 = vmatpush1.bf16.msra.mxu0 %v2193_v25  ;;  %v2223_v5 = vpack.c.bf16 %v144_v3, %v142_v2  ;;  %v143_v7 = vld [vmem:[%s4310_s1 + $0x170] sm:$0xff]  ;;  %v146_v8 = vld [vmem:[%s4310_s1 + $0x188] sm:$0xff]  ;;  %v148_v9 = vld [vmem:[%s4310_s1 + $0x198] sm:$0xff] }
  0x12   :  { %2196 = vmatprep.subr.bf16.mxu0 %v2195_v26  ;;  %v2225_v10 = vpack.c.bf16 %v143_v7, %v141_v6  ;;  %v2227_v11 = vpack.c.bf16 %v148_v9, %v146_v8  ;;  %v145_v12 = vld [vmem:[%s4310_s1 + $0x180] sm:$0xff]  ;;  %v147_v13 = vld [vmem:[%s4310_s1 + $0x190] sm:$0xff]  ;;  %v150_v14 = vld [vmem:[%s4310_s1 + $0x1a8] sm:$0xff] }
  0x13   :  { %v152_v15 = vld [vmem:[%s4310_s1 + $0x1b8] sm:$0xff]  ;;  %v2229_v16 = vpack.c.bf16 %v147_v13, %v145_v12  ;;  %v149_v18 = vld [vmem:[%s4310_s1 + $0x1a0] sm:$0xff]  ;;  %v151_v19 = vld [vmem:[%s4310_s1 + $0x1b0] sm:$0xff] }
  0x14   :  { %v2231_v17 = vpack.c.bf16 %v152_v15, %v150_v14  ;;  %v154_v20 = vld [vmem:[%s4310_s1 + $0x1c8] sm:$0xff]  ;;  %v156_v21 = vld [vmem:[%s4310_s1 + $0x1d8] sm:$0xff]  ;;  %v2233_v22 = vpack.c.bf16 %v151_v19, %v149_v18  ;;  %v153_v24 = vld [vmem:[%s4310_s1 + $0x1c0] sm:$0xff] }
  0x15   :  { %2198 = vmatpush1.bf16.msra.mxu0 %v2197_v31  ;;  %v2235_v23 = vpack.c.bf16 %v156_v21, %v154_v20  ;;  %v155_v25 = vld [vmem:[%s4310_s1 + $0x1d0] sm:$0xff] }
  0x16   :  { %2200 = vmatprep.subr.bf16.mxu0 %v2199_v32 }
  0x19   :  { %2202 = vmatpush1.bf16.msra.mxu0 %v2201_v37 }
  0x1a   :  { %2204 = vmatprep.subr.bf16.mxu0 %v2203_v38 }
  0x1d   :  { %2206 = vmatpush1.bf16.msra.mxu0 %v2205_v44 }
  0x1e   :  { %2208 = vmatprep.subr.bf16.mxu0 %v2207_v45 }
  0x21   :  { %2210 = vmatpush1.bf16.msra.mxu0 %v2209_v50 }
  0x22   :  { %2212 = vmatprep.subr.bf16.mxu0 %v2211_v51 }
  0x25   :  { %2214 = vmatpush1.bf16.msra.mxu0 %v2213_v56 }
  0x26   :  { %2216 = vmatprep.subr.bf16.mxu0 %v2215_v57 }
  0x29   :  { %2218 = vmatpush1.bf16.msra.mxu0 %v2217_v62 }
  0x2a   :  { %2220 = vmatprep.subr.bf16.mxu0 %v2219_v63 }
  0x2d   :  { %2222 = vmatpush1.bf16.msra.mxu0 %v2221_v4 }
  0x2e   :  { %2224 = vmatprep.subr.bf16.mxu0 %v2223_v5 }
  0x31   :  { %2226 = vmatpush1.bf16.msra.mxu0 %v2225_v10 }
  0x32   :  { %2228 = vmatprep.subr.bf16.mxu0 %v2227_v11 }
  0x35   :  { %2230 = vmatpush1.bf16.msra.mxu0 %v2229_v16 }
  0x36   :  { %2232 = vmatprep.subr.bf16.mxu0 %v2231_v17 }
  0x37   :  { %14 = vsyncpa [#allocation4], 0  ;;  %v158_v26 = vld [vmem:[%s4310_s1 + $0x1e8] sm:$0xff]  ;;  %v160_v27 = vld [vmem:[%s4310_s1 + $0x1f8] sm:$0xff]  ;;  %v2237_v28 = vpack.c.bf16 %v155_v25, %v153_v24  ;;  %vm209_vm0 = vcmask 130048   ;;  %vm613_vm1 = vcmask 261120  }
  0x38   :  { %v2239_v29 = vpack.c.bf16 %v160_v27, %v158_v26  ;;  %v157_v30 = vld [vmem:[%s4310_s1 + $0x1e0] sm:$0xff]  ;;  %v159_v31 = vld [vmem:[%s4310_s1 + $0x1f0] sm:$0xff]  ;;  %v162_v32 = vld [vmem:[%s4310_s1 + $0x208] sm:$0xff]  ;;  %vm720_vm2 = vcmask 1045504   ;;  %vm962_vm3 = vcmask 1043456   ;;  %vm1120_vm4 = vcmask 1041408  }
  0x39   :  { %2234 = vmatpush1.bf16.msra.mxu0 %v2233_v22  ;;  %v164_v33 = vld [vmem:[%s4310_s1 + $0x218] sm:$0xff]  ;;  %v2241_v34 = vpack.c.bf16 %v159_v31, %v157_v30  ;;  %v161_v36 = vld [vmem:[%s4310_s1 + $0x200] sm:$0xff]  ;;  %v163_v37 = vld [vmem:[%s4310_s1 + $0x210] sm:$0xff]  ;;  %vm1388_vm5 = vcmask 883712   ;;  %vm2689_vm6 = vmmov 0   ;;  %s2692_s18 = smov 24  }
  0x3a   :  { %2236 = vmatprep.subr.bf16.mxu0 %v2235_v23  ;;  %v2243_v35 = vpack.c.bf16 %v164_v33, %v162_v32  ;;  %v166_v38 = vld [vmem:[%s4310_s1 + $0x228] sm:$0xff]  ;;  %v168_v39 = vld [vmem:[%s4310_s1 + $0x238] sm:$0xff]  ;;  %v33_v40 = vld [vmem:[%s4309_s0] sm:$0xff]  ;;  %v2245_v41 = vpack.c.bf16 %v163_v37, %v161_v36  ;;  %s2693_s19 = smov 36   ;;  %vm1423_vm7 = vcmask 97280   ;;  %vm1433_vm8 = vcmask 195584  }
  0x3b   :  { %v38_v42 = vld [vmem:[%s4309_s0 + $0x28] sm:$0xff]  ;;  %v2247_v43 = vpack.c.bf16 %v168_v39, %v166_v38  ;;  %v165_v44 = vld [vmem:[%s4310_s1 + $0x220] sm:$0xff]  ;;  %v167_v45 = vld [vmem:[%s4310_s1 + $0x230] sm:$0xff]  ;;  %vm1443_vm9 = vcmask 293888   ;;  %vm1532_vm10 = vcmask 392192   ;;  %vm1761_vm11 = vcmask 408576  }
  0x3c   :  { %v170_v46 = vld [vmem:[%s4310_s1 + $0x248] sm:$0xff]  ;;  %v172_v47 = vld [vmem:[%s4310_s1 + $0x258] sm:$0xff]  ;;  %v37_v48 = vld [vmem:[%s4309_s0 + $0x20] sm:$0xff]  ;;  %v2249_v49 = vpack.c.bf16 %v167_v45, %v165_v44  ;;  %vm1838_vm12 = vcmask 74752  }
  0x3d   :  { %2238 = vmatpush1.bf16.msra.mxu0 %v2237_v28  ;;  %v42_v50 = vld [vmem:[%s4309_s0 + $0x48] sm:$0xff]  ;;  %v2251_v51 = vpack.c.bf16 %v172_v47, %v170_v46  ;;  %v169_v52 = vld [vmem:[%s4310_s1 + $0x240] sm:$0xff]  ;;  %v171_v53 = vld [vmem:[%s4310_s1 + $0x250] sm:$0xff] }
  0x3e   :  { %2240 = vmatprep.subr.bf16.mxu0 %v2239_v29  ;;  %v174_v54 = vld [vmem:[%s4310_s1 + $0x268] sm:$0xff]  ;;  %v176_v55 = vld [vmem:[%s4310_s1 + $0x278] sm:$0xff]  ;;  %v41_v56 = vld [vmem:[%s4309_s0 + $0x40] sm:$0xff]  ;;  %v2253_v57 = vpack.c.bf16 %v171_v53, %v169_v52 }
  0x3f   :  { %v46_v58 = vld [vmem:[%s4309_s0 + $0x68] sm:$0xff]  ;;  %v2255_v59 = vpack.c.bf16 %v176_v55, %v174_v54  ;;  %v173_v60 = vld [vmem:[%s4310_s1 + $0x260] sm:$0xff]  ;;  %v175_v61 = vld [vmem:[%s4310_s1 + $0x270] sm:$0xff] }
  0x40   :  { %v178_v62 = vld [vmem:[%s4310_s1 + $0x288] sm:$0xff]  ;;  %v180_v63 = vld [vmem:[%s4310_s1 + $0x298] sm:$0xff]  ;;  %v45_v0 = vld [vmem:[%s4309_s0 + $0x60] sm:$0xff]  ;;  %v2257_v1 = vpack.c.bf16 %v175_v61, %v173_v60 }
  0x41   :  { %2242 = vmatpush1.bf16.msra.mxu0 %v2241_v34  ;;  %v50_v2 = vld [vmem:[%s4309_s0 + $0x88] sm:$0xff]  ;;  %v2259_v3 = vpack.c.bf16 %v180_v63, %v178_v62  ;;  %v177_v4 = vld [vmem:[%s4310_s1 + $0x280] sm:$0xff]  ;;  %v179_v5 = vld [vmem:[%s4310_s1 + $0x290] sm:$0xff] }
  0x42   :  { %2244 = vmatprep.subr.bf16.mxu0 %v2243_v35  ;;  %v182_v6 = vld [vmem:[%s4310_s1 + $0x2a8] sm:$0xff]  ;;  %v184_v7 = vld [vmem:[%s4310_s1 + $0x2b8] sm:$0xff]  ;;  %v49_v8 = vld [vmem:[%s4309_s0 + $0x80] sm:$0xff]  ;;  %v2261_v9 = vpack.c.bf16 %v179_v5, %v177_v4 }
  0x43   :  { %v54_v10 = vld [vmem:[%s4309_s0 + $0xa8] sm:$0xff]  ;;  %v2263_v11 = vpack.c.bf16 %v184_v7, %v182_v6  ;;  %v181_v12 = vld [vmem:[%s4310_s1 + $0x2a0] sm:$0xff]  ;;  %v183_v13 = vld [vmem:[%s4310_s1 + $0x2b0] sm:$0xff] }
  0x44   :  { %323 = vmatmul.mubr.f32.vlgmr.msra.gmra.mrb[0].mxu0 %v33_v40  ;;  %v186_v14 = vld [vmem:[%s4310_s1 + $0x2c8] sm:$0xff]  ;;  %v188_v15 = vld [vmem:[%s4310_s1 + $0x2d8] sm:$0xff]  ;;  %v53_v16 = vld [vmem:[%s4309_s0 + $0xa0] sm:$0xff]  ;;  %v2265_v17 = vpack.c.bf16 %v183_v13, %v181_v12 }
  0x45   :  { %2246 = vmatpush1.bf16.msra.mxu0 %v2245_v41  ;;  %328 = vmatprep.mubr.f32.mxu0 %v38_v42  ;;  %v58_v18 = vld [vmem:[%s4309_s0 + $0xc8] sm:$0xff]  ;;  %v2267_v19 = vpack.c.bf16 %v188_v15, %v186_v14  ;;  %v185_v20 = vld [vmem:[%s4310_s1 + $0x2c0] sm:$0xff]  ;;  %v187_v21 = vld [vmem:[%s4310_s1 + $0x2d0] sm:$0xff] }
  0x46   :  { %2248 = vmatprep.subr.bf16.mxu0 %v2247_v43  ;;  %v190_v22 = vld [vmem:[%s4310_s1 + $0x2e8] sm:$0xff]  ;;  %v192_v23 = vld [vmem:[%s4310_s1 + $0x2f8] sm:$0xff]  ;;  %v57_v24 = vld [vmem:[%s4309_s0 + $0xc0] sm:$0xff]  ;;  %v2269_v25 = vpack.c.bf16 %v187_v21, %v185_v20 }
  0x47   :  { %v62_v26 = vld [vmem:[%s4309_s0 + $0xe8] sm:$0xff]  ;;  %v2271_v27 = vpack.c.bf16 %v192_v23, %v190_v22  ;;  %v189_v28 = vld [vmem:[%s4310_s1 + $0x2e0] sm:$0xff]  ;;  %v191_v29 = vld [vmem:[%s4310_s1 + $0x2f0] sm:$0xff] }
  0x48   :  { %329 = vmatmul.mubr.f32.gmra.mrb[2].mxu0 %v37_v48  ;;  %v194_v30 = vld [vmem:[%s4310_s1 + $0x308] sm:$0xff]  ;;  %v196_v31 = vld [vmem:[%s4310_s1 + $0x318] sm:$0xff]  ;;  %v61_v32 = vld [vmem:[%s4309_s0 + $0xe0] sm:$0xff]  ;;  %v2273_v33 = vpack.c.bf16 %v191_v29, %v189_v28 }
  0x49   :  { %334 = vmatprep.mubr.f32.mxu0 %v42_v50  ;;  %2250 = vmatpush1.bf16.msra.mxu0 %v2249_v49  ;;  %v66_v34 = vld [vmem:[%s4309_s0 + $0x108] sm:$0xff]  ;;  %v2275_v35 = vpack.c.bf16 %v196_v31, %v194_v30  ;;  %v193_v36 = vld [vmem:[%s4310_s1 + $0x300] sm:$0xff]  ;;  %v195_v37 = vld [vmem:[%s4310_s1 + $0x310] sm:$0xff]  ;;  %s2691_s1 = smov 12  }
  0x4a   :  { %2252 = vmatprep.subr.bf16.mxu0 %v2251_v51  ;;  %v65_v38 = vld [vmem:[%s4309_s0 + $0x100] sm:$0xff]  ;;  %v2277_v39 = vpack.c.bf16 %v195_v37, %v193_v36  ;;  %v70_v40 = vld [vmem:[%s4309_s0 + $0x128] sm:$0xff]  ;;  %v36_v54 = vld [vmem:[%s4309_s0 + $0x18] sm:$0xff] }
  0x4b   :  { %v69_v41 = vld [vmem:[%s4309_s0 + $0x120] sm:$0xff]  ;;  %v74_v42 = vld [vmem:[%s4309_s0 + $0x148] sm:$0xff]  ;;  %v35_v55 = vld [vmem:[%s4309_s0 + $0x10] sm:$0xff] }
  0x4c   :  { %335 = vmatmul.mubr.f32.gmra.mrb[4].mxu0 %v41_v56  ;;  %v73_v43 = vld [vmem:[%s4309_s0 + $0x140] sm:$0xff]  ;;  %v78_v44 = vld [vmem:[%s4309_s0 + $0x168] sm:$0xff]  ;;  %v40_v56 = vld [vmem:[%s4309_s0 + $0x38] sm:$0xff] }
  0x4d   :  { %340 = vmatprep.mubr.f32.mxu0 %v46_v58  ;;  %2254 = vmatpush1.bf16.msra.mxu0 %v2253_v57  ;;  %v77_v45 = vld [vmem:[%s4309_s0 + $0x160] sm:$0xff]  ;;  %v82_v46 = vld [vmem:[%s4309_s0 + $0x188] sm:$0xff]  ;;  %v39_v57 = vld [vmem:[%s4309_s0 + $0x30] sm:$0xff] }
  0x4e   :  { %2256 = vmatprep.subr.bf16.mxu0 %v2255_v59  ;;  %v81_v47 = vld [vmem:[%s4309_s0 + $0x180] sm:$0xff]  ;;  %v86_v48 = vld [vmem:[%s4309_s0 + $0x1a8] sm:$0xff]  ;;  %v44_v58 = vld [vmem:[%s4309_s0 + $0x58] sm:$0xff] }
  0x4f   :  { %v85_v49 = vld [vmem:[%s4309_s0 + $0x1a0] sm:$0xff]  ;;  %v90_v50 = vld [vmem:[%s4309_s0 + $0x1c8] sm:$0xff]  ;;  %v43_v59 = vld [vmem:[%s4309_s0 + $0x50] sm:$0xff] }
  0x50   :  { %341 = vmatmul.mubr.f32.gmra.mrb[6].mxu0 %v45_v0  ;;  %v89_v51 = vld [vmem:[%s4309_s0 + $0x1c0] sm:$0xff]  ;;  %v94_v52 = vld [vmem:[%s4309_s0 + $0x1e8] sm:$0xff]  ;;  %v48_v60 = vld [vmem:[%s4309_s0 + $0x78] sm:$0xff] }
  0x51   :  { %346 = vmatprep.mubr.f32.mxu0 %v50_v2  ;;  %2258 = vmatpush1.bf16.msra.mxu0 %v2257_v1  ;;  %v93_v53 = vld [vmem:[%s4309_s0 + $0x1e0] sm:$0xff]  ;;  %v47_v61 = vld [vmem:[%s4309_s0 + $0x70] sm:$0xff]  ;;  %v52_v62 = vld [vmem:[%s4309_s0 + $0x98] sm:$0xff] }
  0x52   :  { %2260 = vmatprep.subr.bf16.mxu0 %v2259_v3  ;;  %v51_v63 = vld [vmem:[%s4309_s0 + $0x90] sm:$0xff]  ;;  %v56_v0 = vld [vmem:[%s4309_s0 + $0xb8] sm:$0xff]  ;;  %v1883_v22 = vld [vmem:[%s4312_s3 + $0x148] sm:$0xff] }
  0x53   :  { %v55_v1 = vld [vmem:[%s4309_s0 + $0xb0] sm:$0xff]  ;;  %v60_v2 = vld [vmem:[%s4309_s0 + $0xd8] sm:$0xff]  ;;  %v1887_v28 = vld [vmem:[%s4312_s3 + $0x168] sm:$0xff] }
  0x54   :  { %347 = vmatmul.mubr.f32.gmra.mrb[8].mxu0 %v49_v8  ;;  %v59_v3 = vld [vmem:[%s4309_s0 + $0xd0] sm:$0xff]  ;;  %v64_v4 = vld [vmem:[%s4309_s0 + $0xf8] sm:$0xff]  ;;  %v1886_v31 = vld [vmem:[%s4312_s3 + $0x160] sm:$0xff] }
  0x55   :  { %352 = vmatprep.mubr.f32.mxu0 %v54_v10  ;;  %2262 = vmatpush1.bf16.msra.mxu0 %v2261_v9  ;;  %v63_v5 = vld [vmem:[%s4309_s0 + $0xf0] sm:$0xff]  ;;  %v68_v6 = vld [vmem:[%s4309_s0 + $0x118] sm:$0xff]  ;;  %v1890_v37 = vld [vmem:[%s4312_s3 + $0x180] sm:$0xff] }
  0x56   :  { %2264 = vmatprep.subr.bf16.mxu0 %v2263_v11  ;;  %v67_v7 = vld [vmem:[%s4309_s0 + $0x110] sm:$0xff]  ;;  %v72_v8 = vld [vmem:[%s4309_s0 + $0x138] sm:$0xff] }
  0x57   :  { %v71_v9 = vld [vmem:[%s4309_s0 + $0x130] sm:$0xff]  ;;  %v76_v10 = vld [vmem:[%s4309_s0 + $0x158] sm:$0xff] }
  0x58   :  { %353 = vmatmul.mubr.f32.gmra.mrb[10].mxu0 %v53_v16  ;;  %v75_v11 = vld [vmem:[%s4309_s0 + $0x150] sm:$0xff]  ;;  %v80_v12 = vld [vmem:[%s4309_s0 + $0x178] sm:$0xff] }
  0x59   :  { %358 = vmatprep.mubr.f32.mxu0 %v58_v18  ;;  %2266 = vmatpush1.bf16.msra.mxu0 %v2265_v17  ;;  %v79_v13 = vld [vmem:[%s4309_s0 + $0x170] sm:$0xff]  ;;  %v84_v14 = vld [vmem:[%s4309_s0 + $0x198] sm:$0xff] }
  0x5a   :  { %2268 = vmatprep.subr.bf16.mxu0 %v2267_v19  ;;  %v83_v15 = vld [vmem:[%s4309_s0 + $0x190] sm:$0xff]  ;;  %v88_v16 = vld [vmem:[%s4309_s0 + $0x1b8] sm:$0xff] }
  0x5b   :  { %v87_v17 = vld [vmem:[%s4309_s0 + $0x1b0] sm:$0xff]  ;;  %v92_v18 = vld [vmem:[%s4309_s0 + $0x1d8] sm:$0xff] }
  0x5c   :  { %359 = vmatmul.mubr.f32.gmra.mrb[12].mxu0 %v57_v24  ;;  %v91_v19 = vld [vmem:[%s4309_s0 + $0x1d0] sm:$0xff]  ;;  %v96_v20 = vld [vmem:[%s4309_s0 + $0x1f8] sm:$0xff] }
  0x5d   :  { %364 = vmatprep.mubr.f32.mxu0 %v62_v26  ;;  %2270 = vmatpush1.bf16.msra.mxu0 %v2269_v25  ;;  %v95_v21 = vld [vmem:[%s4309_s0 + $0x1f0] sm:$0xff]  ;;  %v1885_v23 = vld [vmem:[%s4312_s3 + $0x158] sm:$0xff]  ;;  %v1882_v25 = vld [vmem:[%s4312_s3 + $0x140] sm:$0xff] }
  0x5e   :  { %2272 = vmatprep.subr.bf16.mxu0 %v2271_v27  ;;  %v2279_v24 = vpack.c.bf16 %v1885_v23, %v1883_v22  ;;  %v1884_v26 = vld [vmem:[%s4312_s3 + $0x150] sm:$0xff]  ;;  %v1889_v29 = vld [vmem:[%s4312_s3 + $0x178] sm:$0xff]  ;;  %v199_v22 = vlaneseq }
  0x5f   :  { %v2281_v27 = vpack.c.bf16 %v1884_v26, %v1882_v25  ;;  %v2283_v30 = vpack.c.bf16 %v1889_v29, %v1887_v28 }
  0x60   :  { %365 = vmatmul.mubr.f32.gmra.mrb[14].mxu0 %v61_v32  ;;  %2280 = vmatprep.subr.bf16.mxu1 %v2279_v24  ;;  %v1888_v32 = vld [vmem:[%s4312_s3 + $0x170] sm:$0xff]  ;;  %v3379_v25 = vshrl.u32 %v199_v22, 7 }
  0x61   :  { %370 = vmatprep.mubr.f32.mxu0 %v66_v34  ;;  %2274 = vmatpush1.bf16.msra.mxu0 %v2273_v33  ;;  %v2285_v33 = vpack.c.bf16 %v1888_v32, %v1886_v31  ;;  %v1891_v34 = vld [vmem:[%s4312_s3 + $0x188] sm:$0xff] }
  0x62   :  { %2276 = vmatprep.subr.bf16.mxu0 %v2275_v35  ;;  %2282 = vmatpush1.bf16.msra.mxu1 %v2281_v27  ;;  %v1893_v35 = vld [vmem:[%s4312_s3 + $0x198] sm:$0xff]  ;;  %v201_v28 = vsub.s32 0, %v3379_v25  ;;  %v205_v31 = vsub.s32 1, %v3379_v25 }
  0x63   :  { %2284 = vmatprep.subr.bf16.mxu1 %v2283_v30  ;;  %v2287_v36 = vpack.c.bf16 %v1893_v35, %v1891_v34  ;;  %v197_v30 = vld [vmem:[%s4311_s2] sm:$0x3] }
  0x64   :  { %371 = vmatmul.mubr.f32.gmra.mrb[16].mxu0 %v65_v38  ;;  %v1892_v38 = vld [vmem:[%s4312_s3 + $0x190] sm:$0xff]  ;;  %v3392_v35 = vrot.slane %v197_v30, %v205_v31 }
  0x65   :  { %376 = vmatprep.mubr.f32.mxu0 %v70_v40  ;;  %2278 = vmatpush1.bf16.msra.mxu0 %v2277_v39  ;;  %v2289_v39 = vpack.c.bf16 %v1892_v38, %v1890_v37  ;;  %v1895_v40 = vld [vmem:[%s4312_s3 + $0x1a8] sm:$0xff] }
  0x66   :  { %2286 = vmatpush1.bf16.msra.mxu1 %v2285_v33  ;;  %v3388_v33 = vrot.slane %v197_v30, %v201_v28 }
  0x67   :  { %2288 = vmatprep.subr.bf16.mxu1 %v2287_v36 }
  0x68   :  { %377 = vmatmul.mubr.f32.gmra.mrb[18].mxu0 %v69_v41  ;;  %v1897_v41 = vld [vmem:[%s4312_s3 + $0x1b8] sm:$0xff] }
  0x69   :  { %382 = vmatprep.mubr.f32.mxu0 %v74_v42  ;;  %v2291_v42 = vpack.c.bf16 %v1897_v41, %v1895_v40 }
  0x6a   :  { %2290 = vmatpush1.bf16.msra.mxu1 %v2289_v39 }
  0x6b   :  { %2292 = vmatprep.subr.bf16.mxu1 %v2291_v42 }
  0x6c   :  { %383 = vmatmul.mubr.f32.gmra.mrb[20].mxu0 %v73_v43  ;;  %v1894_v43 = vld [vmem:[%s4312_s3 + $0x1a0] sm:$0xff] }
  0x6d   :  { %388 = vmatprep.mubr.f32.mxu0 %v78_v44  ;;  %v1896_v44 = vld [vmem:[%s4312_s3 + $0x1b0] sm:$0xff] }
  0x70   :  { %389 = vmatmul.mubr.f32.gmra.mrb[22].mxu0 %v77_v45  ;;  %v2293_v45 = vpack.c.bf16 %v1896_v44, %v1894_v43 }
  0x71   :  { %394 = vmatprep.mubr.f32.mxu0 %v82_v46  ;;  %v1899_v46 = vld [vmem:[%s4312_s3 + $0x1c8] sm:$0xff] }
  0x72   :  { %2294 = vmatpush1.bf16.msra.mxu1 %v2293_v45 }
  0x74   :  { %395 = vmatmul.mubr.f32.gmra.mrb[24].mxu0 %v81_v47  ;;  %v1901_v47 = vld [vmem:[%s4312_s3 + $0x1d8] sm:$0xff] }
  0x75   :  { %400 = vmatprep.mubr.f32.mxu0 %v86_v48  ;;  %v2295_v48 = vpack.c.bf16 %v1901_v47, %v1899_v46 }
  0x77   :  { %2296 = vmatprep.subr.bf16.mxu1 %v2295_v48 }
  0x78   :  { %401 = vmatmul.mubr.f32.gmra.mrb[26].mxu0 %v85_v49  ;;  %v1898_v49 = vld [vmem:[%s4312_s3 + $0x1c0] sm:$0xff] }
  0x79   :  { %406 = vmatprep.mubr.f32.mxu0 %v90_v50  ;;  %v1900_v50 = vld [vmem:[%s4312_s3 + $0x1d0] sm:$0xff] }
  0x7c   :  { %407 = vmatmul.mubr.f32.gmra.mrb[28].mxu0 %v89_v51  ;;  %v2297_v51 = vpack.c.bf16 %v1900_v50, %v1898_v49 }
  0x7d   :  { %412 = vmatprep.mubr.f32.mxu0 %v94_v52  ;;  %v1903_v52 = vld [vmem:[%s4312_s3 + $0x1e8] sm:$0xff] }
  0x7e   :  { %2298 = vmatpush1.bf16.msra.mxu1 %v2297_v51 }
  0x80   :  { %413 = vmatmul.mubr.f32.gmra.mrb[30].mxu0 %v93_v53  ;;  %v1905_v53 = vld [vmem:[%s4312_s3 + $0x1f8] sm:$0xff] }
  0x81   :  { %1866 = vmatprep.mubr.msk.f32.mxu0 %vm209_vm0, %v36_v54  ;;  %v2299_v54 = vpack.c.bf16 %v1905_v53, %v1903_v52 }
  0x83   :  { %2300 = vmatprep.subr.bf16.mxu1 %v2299_v54 }
  0x84   :  { %484 = vmatmul.mubr.f32.vlgmr.msra.gmra.mrb[0].mxu0 %v35_v55  ;;  %v1902_v55 = vld [vmem:[%s4312_s3 + $0x1e0] sm:$0xff] }
  0x85   :  { %1867 = vmatprep.mubr.msk.f32.mxu0 %vm209_vm0, %v40_v56  ;;  %v1904_v56 = vld [vmem:[%s4312_s3 + $0x1f0] sm:$0xff] }
  0x88   :  { %490 = vmatmul.mubr.f32.gmra.mrb[2].mxu0 %v39_v57  ;;  %v2301_v57 = vpack.c.bf16 %v1904_v56, %v1902_v55 }
  0x89   :  { %1868 = vmatprep.mubr.msk.f32.mxu0 %vm209_vm0, %v44_v58  ;;  %v1907_v58 = vld [vmem:[%s4312_s3 + $0x208] sm:$0xff] }
  0x8a   :  { %2302 = vmatpush1.bf16.msra.mxu1 %v2301_v57 }
  0x8c   :  { %496 = vmatmul.mubr.f32.gmra.mrb[4].mxu0 %v43_v59  ;;  %v1909_v59 = vld [vmem:[%s4312_s3 + $0x218] sm:$0xff] }
  0x8d   :  { %1869 = vmatprep.mubr.msk.f32.mxu0 %vm209_vm0, %v48_v60  ;;  %v2303_v60 = vpack.c.bf16 %v1909_v59, %v1907_v58 }
  0x8f   :  { %2304 = vmatprep.subr.bf16.mxu1 %v2303_v60 }
  0x90   :  { %502 = vmatmul.mubr.f32.gmra.mrb[6].mxu0 %v47_v61  ;;  %v1906_v61 = vld [vmem:[%s4312_s3 + $0x200] sm:$0xff] }
  0x91   :  { %1870 = vmatprep.mubr.msk.f32.mxu0 %vm209_vm0, %v52_v62  ;;  %v1908_v62 = vld [vmem:[%s4312_s3 + $0x210] sm:$0xff] }
  0x94   :  { %508 = vmatmul.mubr.f32.gmra.mrb[8].mxu0 %v51_v63  ;;  %v2305_v63 = vpack.c.bf16 %v1908_v62, %v1906_v61 }
  0x95   :  { %1871 = vmatprep.mubr.msk.f32.mxu0 %vm209_vm0, %v56_v0  ;;  %v1911_v0 = vld [vmem:[%s4312_s3 + $0x228] sm:$0xff] }
  0x96   :  { %2306 = vmatpush1.bf16.msra.mxu1 %v2305_v63 }
  0x98   :  { %514 = vmatmul.mubr.f32.gmra.mrb[10].mxu0 %v55_v1  ;;  %v1913_v1 = vld [vmem:[%s4312_s3 + $0x238] sm:$0xff] }
  0x99   :  { %1872 = vmatprep.mubr.msk.f32.mxu0 %vm209_vm0, %v60_v2  ;;  %v2307_v2 = vpack.c.bf16 %v1913_v1, %v1911_v0 }
  0x9b   :  { %2308 = vmatprep.subr.bf16.mxu1 %v2307_v2 }
  0x9c   :  { %520 = vmatmul.mubr.f32.gmra.mrb[12].mxu0 %v59_v3  ;;  %v1910_v3 = vld [vmem:[%s4312_s3 + $0x220] sm:$0xff] }
  0x9d   :  { %1873 = vmatprep.mubr.msk.f32.mxu0 %vm209_vm0, %v64_v4  ;;  %v1912_v4 = vld [vmem:[%s4312_s3 + $0x230] sm:$0xff] }
  0xa0   :  { %526 = vmatmul.mubr.f32.gmra.mrb[14].mxu0 %v63_v5  ;;  %v2309_v5 = vpack.c.bf16 %v1912_v4, %v1910_v3 }
  0xa1   :  { %1874 = vmatprep.mubr.msk.f32.mxu0 %vm209_vm0, %v68_v6  ;;  %v1915_v6 = vld [vmem:[%s4312_s3 + $0x248] sm:$0xff] }
  0xa2   :  { %2310 = vmatpush1.bf16.msra.mxu1 %v2309_v5 }
  0xa4   :  { %532 = vmatmul.mubr.f32.gmra.mrb[16].mxu0 %v67_v7  ;;  %v1917_v7 = vld [vmem:[%s4312_s3 + $0x258] sm:$0xff] }
  0xa5   :  { %1875 = vmatprep.mubr.msk.f32.mxu0 %vm209_vm0, %v72_v8  ;;  %v2311_v8 = vpack.c.bf16 %v1917_v7, %v1915_v6 }
  0xa7   :  { %2312 = vmatprep.subr.bf16.mxu1 %v2311_v8 }
  0xa8   :  { %538 = vmatmul.mubr.f32.gmra.mrb[18].mxu0 %v71_v9  ;;  %v1914_v9 = vld [vmem:[%s4312_s3 + $0x240] sm:$0xff] }
  0xa9   :  { %1876 = vmatprep.mubr.msk.f32.mxu0 %vm209_vm0, %v76_v10  ;;  %v1916_v10 = vld [vmem:[%s4312_s3 + $0x250] sm:$0xff] }
  0xac   :  { %544 = vmatmul.mubr.f32.gmra.mrb[20].mxu0 %v75_v11  ;;  %v2313_v11 = vpack.c.bf16 %v1916_v10, %v1914_v9 }
  0xad   :  { %1877 = vmatprep.mubr.msk.f32.mxu0 %vm209_vm0, %v80_v12  ;;  %v1919_v12 = vld [vmem:[%s4312_s3 + $0x268] sm:$0xff] }
  0xae   :  { %2314 = vmatpush1.bf16.msra.mxu1 %v2313_v11 }
  0xb0   :  { %550 = vmatmul.mubr.f32.gmra.mrb[22].mxu0 %v79_v13  ;;  %v1921_v13 = vld [vmem:[%s4312_s3 + $0x278] sm:$0xff] }
  0xb1   :  { %1878 = vmatprep.mubr.msk.f32.mxu0 %vm209_vm0, %v84_v14  ;;  %v2315_v14 = vpack.c.bf16 %v1921_v13, %v1919_v12 }
  0xb3   :  { %2316 = vmatprep.subr.bf16.mxu1 %v2315_v14 }
  0xb4   :  { %556 = vmatmul.mubr.f32.gmra.mrb[24].mxu0 %v83_v15  ;;  %v1918_v15 = vld [vmem:[%s4312_s3 + $0x260] sm:$0xff] }
  0xb5   :  { %1879 = vmatprep.mubr.msk.f32.mxu0 %vm209_vm0, %v88_v16  ;;  %v1920_v16 = vld [vmem:[%s4312_s3 + $0x270] sm:$0xff] }
  0xb8   :  { %562 = vmatmul.mubr.f32.gmra.mrb[26].mxu0 %v87_v17  ;;  %v2317_v17 = vpack.c.bf16 %v1920_v16, %v1918_v15 }
  0xb9   :  { %1880 = vmatprep.mubr.msk.f32.mxu0 %vm209_vm0, %v92_v18  ;;  %v628_v18 = vld [vmem:[%s4312_s3 + $0x8] sm:$0xff] }
  0xba   :  { %2318 = vmatpush1.bf16.msra.mxu1 %v2317_v17 }
  0xbc   :  { %568 = vmatmul.mubr.f32.gmra.mrb[28].mxu0 %v91_v19  ;;  %v630_v19 = vld [vmem:[%s4312_s3 + $0x18] sm:$0xff] }
  0xbd   :  { %1881 = vmatprep.mubr.msk.f32.mxu0 %vm209_vm0, %v96_v20  ;;  %v2319_v20 = vpack.c.bf16 %v630_v19, %v628_v18 }
  0xbf   :  { %2320 = vmatprep.subr.bf16.mxu1 %v2319_v20 }
  0xc0   :  { %574 = vmatmul.mubr.f32.gmra.mrb[30].mxu0 %v95_v21 }
 0x157   :  { %v485_v21 = vpop.f32.mrb[0].mxu0 }
 0x158   :  { %v487_v23 = vpop.f32.mrb[1].mxu0  ;;  %v2561_v37 = vadd.f32 %v485_v21, %v3388_v33 }
 0x159   :  { %v2562_v40 = vadd.f32 %v487_v23, %v3392_v35 }
 0x15b   :  { %v491_v24 = vpop.f32.mrb[2].mxu0 }
 0x15c   :  { %v493_v26 = vpop.f32.mrb[3].mxu0  ;;  %v2563_v45 = vadd.f32 %v491_v24, %v3388_v33 }
 0x15d   :  { %v2564_v48 = vadd.f32 %v493_v26, %v3392_v35 }
 0x15f   :  { %v497_v27 = vpop.f32.mrb[4].mxu0 }
 0x160   :  { %v499_v29 = vpop.f32.mrb[5].mxu0  ;;  %v2565_v53 = vadd.f32 %v497_v27, %v3388_v33 }
 0x161   :  { %v3405_v56 = vadd.f32 %v499_v29, %v3392_v35 }
 0x163   :  { %v503_v32 = vpop.f32.mrb[6].mxu0 }
 0x164   :  { %v505_v34 = vpop.f32.mrb[7].mxu0  ;;  %v3410_v61 = vadd.f32 %v503_v32, %v3388_v33 }
 0x165   :  { %v3416_v0 = vadd.f32 %v505_v34, %v3392_v35 }
 0x167   :  { %v509_v36 = vpop.f32.mrb[8].mxu0 }
 0x168   :  { %v2569_v38 = vadd.f32 %v509_v36, %v3388_v33  ;;  %v511_v39 = vpop.f32.mrb[9].mxu0 }
 0x169   :  { %v2570_v41 = vadd.f32 %v511_v39, %v3392_v35 }
 0x16a   :  { %v580_v42 = vmax.f32 %v2561_v37, %v2569_v38 }
 0x16b   :  { %v581_v43 = vmax.f32 %v2562_v40, %v2570_v41  ;;  %v515_v44 = vpop.f32.mrb[10].mxu0 }
 0x16c   :  { %v2571_v46 = vadd.f32 %v515_v44, %v3388_v33  ;;  %v517_v47 = vpop.f32.mrb[11].mxu0 }
 0x16d   :  { %v2572_v49 = vadd.f32 %v517_v47, %v3392_v35 }
 0x16e   :  { %v582_v50 = vmax.f32 %v2563_v45, %v2571_v46 }
 0x16f   :  { %v583_v51 = vmax.f32 %v2564_v48, %v2572_v49  ;;  %v521_v52 = vpop.f32.mrb[12].mxu0 }
 0x170   :  { %v2573_v54 = vadd.f32 %v521_v52, %v3388_v33  ;;  %v523_v55 = vpop.f32.mrb[13].mxu0 }
 0x171   :  { %v2574_v57 = vadd.f32 %v523_v55, %v3392_v35 }
 0x172   :  { %v584_v58 = vmax.f32 %v2565_v53, %v2573_v54 }
 0x173   :  { %v585_v59 = vmax.f32 %v3405_v56, %v2574_v57  ;;  %v527_v60 = vpop.f32.mrb[14].mxu0 }
 0x174   :  { %v3413_v62 = vadd.f32 %v527_v60, %v3388_v33  ;;  %v529_v63 = vpop.f32.mrb[15].mxu0 }
 0x175   :  { %v2576_v1 = vadd.f32 %v529_v63, %v3392_v35 }
 0x176   :  { %v586_v2 = vmax.f32 %v3410_v61, %v3413_v62 }
 0x177   :  { %v587_v3 = vmax.f32 %v3416_v0, %v2576_v1  ;;  %v533_v4 = vpop.f32.mrb[16].mxu0 }
 0x178   :  { %v535_v5 = vpop.f32.mrb[17].mxu0  ;;  %v2577_v13 = vadd.f32 %v533_v4, %v3388_v33 }
 0x179   :  { %v2578_v16 = vadd.f32 %v535_v5, %v3392_v35 }
 0x17b   :  { %v539_v6 = vpop.f32.mrb[18].mxu0 }
 0x17c   :  { %v541_v7 = vpop.f32.mrb[19].mxu0  ;;  %v2579_v21 = vadd.f32 %v539_v6, %v3388_v33  ;;  %v634_v6 = vld [vmem:[%s4312_s3 + $0x38] sm:$0xff] }
 0x17d   :  { %v2580_v26 = vadd.f32 %v541_v7, %v3392_v35 }
 0x17f   :  { %v545_v8 = vpop.f32.mrb[20].mxu0 }
 0x180   :  { %v547_v9 = vpop.f32.mrb[21].mxu0  ;;  %v2581_v38 = vadd.f32 %v545_v8, %v3388_v33 }
 0x183   :  { %v551_v10 = vpop.f32.mrb[22].mxu0 }
 0x184   :  { %v553_v11 = vpop.f32.mrb[23].mxu0  ;;  %v2583_v52 = vadd.f32 %v551_v10, %v3388_v33 }
 0x185   :  { %v2584_v55 = vadd.f32 %v553_v11, %v3392_v35 }
 0x187   :  { %v557_v12 = vpop.f32.mrb[24].mxu0 }
 0x188   :  { %v2585_v14 = vadd.f32 %v557_v12, %v3388_v33  ;;  %v559_v15 = vpop.f32.mrb[25].mxu0 }
 0x189   :  { %v2586_v17 = vadd.f32 %v559_v15, %v3392_v35 }
 0x18a   :  { %v588_v18 = vmax.f32 %v2577_v13, %v2585_v14  ;;  %v631_v13 = vld [vmem:[%s4312_s3 + $0x20] sm:$0xff]  ;;  %v633_v14 = vld [vmem:[%s4312_s3 + $0x30] sm:$0xff] }
 0x18b   :  { %v589_v19 = vmax.f32 %v2578_v16, %v2586_v17  ;;  %v563_v20 = vpop.f32.mrb[26].mxu0 }
 0x18c   :  { %v3427_v22 = vmax.f32 %v580_v42, %v588_v18  ;;  %v2587_v23 = vadd.f32 %v563_v20, %v3388_v33  ;;  %v565_v24 = vpop.f32.mrb[27].mxu0  ;;  %v2582_v42 = vadd.f32 %v547_v9, %v3392_v35  ;;  %v636_v18 = vld [vmem:[%s4312_s3 + $0x48] sm:$0xff] }
 0x18d   :  { %v597_v27 = vmax.f32 %v581_v43, %v589_v19  ;;  %v2588_v29 = vadd.f32 %v565_v24, %v3392_v35  ;;  %v638_v19 = vld [vmem:[%s4312_s3 + $0x58] sm:$0xff] }
 0x18e   :  { %v604_v30 = vmax.f32 %v3427_v22, 0.0  ;;  %v590_v32 = vmax.f32 %v2579_v21, %v2587_v23  ;;  %v2325_v21 = vpack.c.bf16 %v633_v14, %v631_v13  ;;  %v2327_v24 = vpack.c.bf16 %v638_v19, %v636_v18  ;;  %v659_v14 = vld [vmem:[%s4312_s3 + $0x100] sm:$0xff]  ;;  %v666_v18 = vld [vmem:[%s4312_s3 + $0x138] sm:$0xff]  ;;  %v1941_v22 = vld [vmem:[%s4312_s3 + $0x2e8] sm:$0xff] }
 0x18f   :  { %v605_v34 = vmax.f32 %v597_v27, 0.0  ;;  %v591_v36 = vmax.f32 %v2580_v26, %v2588_v29  ;;  %v569_v37 = vpop.f32.mrb[28].mxu0  ;;  %v635_v27 = vld [vmem:[%s4312_s3 + $0x40] sm:$0xff]  ;;  %v637_v29 = vld [vmem:[%s4312_s3 + $0x50] sm:$0xff] }
 0x190   :  { %612 = vst [vmem:[#allocation2] sm:$0xff] %v604_v30  ;;  %v598_v39 = vmax.f32 %v582_v50, %v590_v32  ;;  %v2589_v40 = vadd.f32 %v569_v37, %v3388_v33  ;;  %v571_v41 = vpop.f32.mrb[29].mxu0  ;;  %v640_v37 = vld [vmem:[%s4312_s3 + $0x68] sm:$0xff] }
 0x191   :  { %614 = vst.msk [vmem:[#allocation2 + $0x8] sm:$0xff] %vm613_vm1, %v605_v34  ;;  %v599_v43 = vmax.f32 %v583_v51, %v591_v36  ;;  %v2590_v44 = vadd.f32 %v571_v41, %v3392_v35 }
 0x192   :  { %v3440_v45 = vmax.f32 %v598_v39, 0.0  ;;  %v592_v46 = vmax.f32 %v2581_v38, %v2589_v40  ;;  %v642_v38 = vld [vmem:[%s4312_s3 + $0x78] sm:$0xff]  ;;  %v2329_v40 = vpack.c.bf16 %v637_v29, %v635_v27 }
 0x193   :  { %v607_v47 = vmax.f32 %v599_v43, 0.0  ;;  %v593_v48 = vmax.f32 %v2582_v42, %v2590_v44  ;;  %v575_v49 = vpop.f32.mrb[30].mxu0  ;;  %v2331_v42 = vpack.c.bf16 %v642_v38, %v640_v37  ;;  %v639_v43 = vld [vmem:[%s4312_s3 + $0x60] sm:$0xff]  ;;  %v641_v44 = vld [vmem:[%s4312_s3 + $0x70] sm:$0xff]  ;;  %v1935_v37 = vld [vmem:[%s4312_s3 + $0x2b8] sm:$0xff] }
 0x194   :  { %v600_v53 = vmax.f32 %v584_v58, %v592_v46  ;;  %v2591_v50 = vadd.f32 %v575_v49, %v3388_v33  ;;  %v577_v54 = vpop.f32.mrb[31].mxu0  ;;  %v722_v9 = vrot.slane %v3440_v45, 2 }
 0x195   :  { %616 = vst.msk [vmem:[#allocation2 + $0x18] sm:$0xff] %vm613_vm1, %v607_v47  ;;  %v601_v56 = vmax.f32 %v585_v59, %v593_v48  ;;  %v2592_v51 = vadd.f32 %v577_v54, %v3392_v35  ;;  %v627_v59 = vld [vmem:[%s4312_s3] sm:$0xff]  ;;  %v629_v35 = vld [vmem:[%s4312_s3 + $0x10] sm:$0xff]  ;;  %v644_v47 = vld [vmem:[%s4312_s3 + $0x88] sm:$0xff] }
 0x196   :  { %v3447_v57 = vmax.f32 %v600_v53, 0.0  ;;  %v594_v60 = vmax.f32 %v2583_v52, %v2591_v50  ;;  %v2321_v10 = vpack.c.bf16 %v629_v35, %v627_v59  ;;  %v646_v48 = vld [vmem:[%s4312_s3 + $0x98] sm:$0xff]  ;;  %v2333_v52 = vpack.c.bf16 %v641_v44, %v639_v43  ;;  %v643_v50 = vld [vmem:[%s4312_s3 + $0x80] sm:$0xff]  ;;  %v645_v54 = vld [vmem:[%s4312_s3 + $0x90] sm:$0xff] }
 0x197   :  { %v609_v61 = vmax.f32 %v601_v56, 0.0  ;;  %v595_v62 = vmax.f32 %v2584_v55, %v2592_v51  ;;  %v667_v0 = vld [vmem:[#allocation2] sm:$0xfc]  ;;  %v2335_v53 = vpack.c.bf16 %v646_v48, %v644_v47  ;;  %v648_v55 = vld [vmem:[%s4312_s3 + $0xa8] sm:$0xff]  ;;  %v650_v56 = vld [vmem:[%s4312_s3 + $0xb8] sm:$0xff]  ;;  %v2337_v51 = vpack.c.bf16 %v645_v54, %v643_v50 }
 0x198   :  { %v3449_v63 = vmax.f32 %v586_v2, %v594_v60  ;;  %v668_v1 = vld [vmem:[#allocation2 + $0x8] sm:$0xfc]  ;;  %v721_v5 = vrot.slane %v667_v0, 2  ;;  %v727_v17 = vrot.slane %v3447_v57, 2  ;;  %v2339_v60 = vpack.c.bf16 %v650_v56, %v648_v55  ;;  %v654_v0 = vld [vmem:[%s4312_s3 + $0xd8] sm:$0xff]  ;;  %v651_v59 = vld [vmem:[%s4312_s3 + $0xc0] sm:$0xff] }
 0x199   :  { %618 = vst.msk [vmem:[#allocation2 + $0x28] sm:$0xff] %vm613_vm1, %v609_v61  ;;  %v603_v58 = vmax.f32 %v587_v3, %v595_v62  ;;  %v632_v3 = vld [vmem:[%s4312_s3 + $0x28] sm:$0xff]  ;;  %v724_v7 = vrot.slane %v668_v1, 2  ;;  %v647_v61 = vld [vmem:[%s4312_s3 + $0xa0] sm:$0xff]  ;;  %v649_v62 = vld [vmem:[%s4312_s3 + $0xb0] sm:$0xff] }
 0x19a   :  { %v610_v33 = vmax.f32 %v3449_v63, 0.0  ;;  %v2323_v12 = vpack.c.bf16 %v634_v6, %v632_v3  ;;  %v723_v15 = vsel %vm720_vm2, %v721_v5, %v722_v9  ;;  %v728_v32 = vsel %vm720_vm2, %v722_v9, %v727_v17  ;;  %v622_v49 = vld [vmem:[#allocation2 + $0x8] sm:$0xff]  ;;  %v653_v35 = vld [vmem:[%s4312_s3 + $0xd0] sm:$0xff]  ;;  %v658_v3 = vld [vmem:[%s4312_s3 + $0xf8] sm:$0xff] }
 0x19b   :  { %v611_v4 = vmax.f32 %v603_v58, 0.0  ;;  %v652_v58 = vld [vmem:[%s4312_s3 + $0xc8] sm:$0xff]  ;;  %v2341_v1 = vpack.c.bf16 %v649_v62, %v647_v61  ;;  %v2345_v6 = vpack.c.bf16 %v653_v35, %v651_v59  ;;  %v657_v9 = vld [vmem:[%s4312_s3 + $0xf0] sm:$0xff]  ;;  %v1939_v43 = vld [vmem:[%s4312_s3 + $0x2d8] sm:$0xff] }
 0x19c   :  { %619 = vst [vmem:[#allocation2 + $0x30] sm:$0xff] %v610_v33  ;;  %v3461_v2 = vld [vmem:[#allocation2 + $0x18] sm:$0xff]  ;;  %v656_v5 = vld [vmem:[%s4312_s3 + $0xe8] sm:$0xff]  ;;  %v1936_v47 = vld [vmem:[%s4312_s3 + $0x2c0] sm:$0xff] }
 0x19d   :  { %620 = vst.msk [vmem:[#allocation2 + $0x38] sm:$0xff] %vm613_vm1, %v611_v4  ;;  %v725_v8 = vrot.slane %v3461_v2, 2  ;;  %v2343_v4 = vpack.c.bf16 %v654_v0, %v652_v58  ;;  %v1938_v48 = vld [vmem:[%s4312_s3 + $0x2d0] sm:$0xff]  ;;  %v1940_v55 = vld [vmem:[%s4312_s3 + $0x2e0] sm:$0xff]  ;;  %v1951_v59 = vld [vmem:[%s4312_s3 + $0x338] sm:$0xff] }
 0x19e   :  { %v1942_v56 = vld [vmem:[%s4312_s3 + $0x2f0] sm:$0xff]  ;;  %v1944_v0 = vld [vmem:[%s4312_s3 + $0x300] sm:$0xff] }
 0x19f   :  { %v726_v11 = vsel %vm720_vm2, %v724_v7, %v725_v8  ;;  %v2347_v7 = vpack.c.bf16 %v658_v3, %v656_v5  ;;  %v2373_v62 = vpack.c.bf16 %v1942_v56, %v1940_v55  ;;  %v1948_v3 = vld [vmem:[%s4312_s3 + $0x320] sm:$0xff]  ;;  %v1977_v56 = vld [vmem:[%s4312_s3 + $0x3f0] sm:$0xff] }
 0x1a0   :  { %1922 = vmatprep.mubr.msk.f32.mxu1 %vm613_vm1, %v726_v11  ;;  %v3481_v16 = vld [vmem:[#allocation2 + $0x28] sm:$0xff]  ;;  %v662_v11 = vld [vmem:[%s4312_s3 + $0x118] sm:$0xff]  ;;  %v1975_v55 = vld [vmem:[%s4312_s3 + $0x3e0] sm:$0xff] }
 0x1a1   :  { %809 = vmatmul.mubr.f32.vlgmr.msra.gmra.mrb[0].mxu1 %v723_v15  ;;  %v729_v20 = vrot.slane %v3481_v16, 2  ;;  %v661_v15 = vld [vmem:[%s4312_s3 + $0x110] sm:$0xff] }
 0x1a2   :  { %2322 = vmatpush1.bf16.msra.mxu1 %v2321_v10  ;;  %v660_v10 = vld [vmem:[%s4312_s3 + $0x108] sm:$0xff]  ;;  %v2353_v19 = vpack.c.bf16 %v661_v15, %v659_v14  ;;  %v1959_v14 = vld [vmem:[%s4312_s3 + $0x378] sm:$0xff] }
 0x1a3   :  { %v730_v23 = vsel %vm720_vm2, %v725_v8, %v729_v20  ;;  %2324 = vmatprep.subr.bf16.mxu1 %v2323_v12  ;;  %v669_v26 = vld [vmem:[#allocation2 + $0x30] sm:$0x3]  ;;  %v655_v8 = vld [vmem:[%s4312_s3 + $0xe0] sm:$0xff]  ;;  %v2351_v13 = vpack.c.bf16 %v662_v11, %v660_v10 }
 0x1a4   :  { %1923 = vmatprep.mubr.msk.f32.mxu1 %vm613_vm1, %v730_v23  ;;  %v670_v34 = vld [vmem:[#allocation2 + $0x38] sm:$0x3]  ;;  %v731_v36 = vrot.slane %v669_v26, 2  ;;  %v2349_v12 = vpack.c.bf16 %v657_v9, %v655_v8  ;;  %v665_v23 = vld [vmem:[%s4312_s3 + $0x130] sm:$0xff]  ;;  %v1952_v11 = vld [vmem:[%s4312_s3 + $0x340] sm:$0xff] }
 0x1a5   :  { %815 = vmatmul.mubr.f32.gmra.mrb[2].mxu1 %v728_v32  ;;  %v733_v39 = vrot.slane %v670_v34, 2  ;;  %v1931_v26 = vld [vmem:[%s4312_s3 + $0x298] sm:$0xff]  ;;  %v1928_v32 = vld [vmem:[%s4312_s3 + $0x280] sm:$0xff]  ;;  %v1930_v34 = vld [vmem:[%s4312_s3 + $0x290] sm:$0xff] }
 0x1a6   :  { %2326 = vmatpush1.bf16.msra.mxu1 %v2325_v21  ;;  %v732_v46 = vsel %vm720_vm2, %v727_v17, %v731_v36  ;;  %v664_v17 = vld [vmem:[%s4312_s3 + $0x128] sm:$0xff]  ;;  %v663_v21 = vld [vmem:[%s4312_s3 + $0x120] sm:$0xff]  ;;  %v2361_v38 = vpack.c.bf16 %v1930_v34, %v1928_v32  ;;  %v1955_v8 = vld [vmem:[%s4312_s3 + $0x358] sm:$0xff] }
 0x1a7   :  { %v734_v41 = vsel %vm720_vm2, %v729_v20, %v733_v39  ;;  %2328 = vmatprep.subr.bf16.mxu1 %v2327_v24  ;;  %v2355_v20 = vpack.c.bf16 %v666_v18, %v664_v17  ;;  %v1929_v24 = vld [vmem:[%s4312_s3 + $0x288] sm:$0xff]  ;;  %v2357_v27 = vpack.c.bf16 %v665_v23, %v663_v21  ;;  %v1956_v18 = vld [vmem:[%s4312_s3 + $0x360] sm:$0xff]  ;;  %v1963_v21 = vld [vmem:[%s4312_s3 + $0x398] sm:$0xff] }
 0x1a8   :  { %1924 = vmatprep.mubr.msk.f32.mxu1 %vm613_vm1, %v734_v41  ;;  %v2359_v29 = vpack.c.bf16 %v1931_v26, %v1929_v24  ;;  %v1933_v36 = vld [vmem:[%s4312_s3 + $0x2a8] sm:$0xff]  ;;  %v1934_v41 = vld [vmem:[%s4312_s3 + $0x2b0] sm:$0xff]  ;;  %v1960_v26 = vld [vmem:[%s4312_s3 + $0x380] sm:$0xff] }
 0x1a9   :  { %821 = vmatmul.mubr.f32.gmra.mrb[4].mxu1 %v732_v46  ;;  %v2363_v39 = vpack.c.bf16 %v1935_v37, %v1933_v36  ;;  %v1967_v32 = vld [vmem:[%s4312_s3 + $0x3b8] sm:$0xff]  ;;  %v1964_v37 = vld [vmem:[%s4312_s3 + $0x3a0] sm:$0xff] }
 0x1aa   :  { %2330 = vmatpush1.bf16.msra.mxu1 %v2329_v40  ;;  %1925 = vmatprep.mubr.msk.f32.mxu1 %vm613_vm1, %v622_v49  ;;  %v1932_v40 = vld [vmem:[%s4312_s3 + $0x2a0] sm:$0xff]  ;;  %v914_v49 = vld [vmem:[#allocation2 + $0x8] sm:$0xf0] }
 0x1ab   :  { %2332 = vmatprep.subr.bf16.mxu1 %v2331_v42  ;;  %v1937_v42 = vld [vmem:[%s4312_s3 + $0x2c8] sm:$0xff]  ;;  %v2365_v44 = vpack.c.bf16 %v1934_v41, %v1932_v40  ;;  %v966_v50 = vrot.slane %v914_v49, 4  ;;  %v1974_v40 = vld [vmem:[%s4312_s3 + $0x3d8] sm:$0xff]  ;;  %v913_v41 = vld [vmem:[#allocation2] sm:$0xf0] }
 0x1ac   :  { %v2367_v46 = vpack.c.bf16 %v1939_v43, %v1937_v42  ;;  %v1978_v49 = vld [vmem:[%s4312_s3 + $0x3f8] sm:$0xff] }
 0x1ae   :  { %2334 = vmatpush1.bf16.msra.mxu1 %v2333_v52  ;;  %v967_v52 = vrot.slane %v3461_v2, 4 }
 0x1af   :  { %2336 = vmatprep.subr.bf16.mxu1 %v2335_v53  ;;  %v2369_v53 = vpack.c.bf16 %v1938_v48, %v1936_v47  ;;  %v963_v47 = vrot.slane %v913_v41, 4  ;;  %v1976_v48 = vld [vmem:[%s4312_s3 + $0x3e8] sm:$0xff] }
 0x1b0   :  { %v968_v61 = vsel %vm962_vm3, %v966_v50, %v967_v52  ;;  %v916_v50 = vld [vmem:[#allocation2 + $0x38] sm:$0xf] }
 0x1b2   :  { %2338 = vmatpush1.bf16.msra.mxu1 %v2337_v51  ;;  %v1945_v51 = vld [vmem:[%s4312_s3 + $0x308] sm:$0xff] }
 0x1b3   :  { %2340 = vmatprep.subr.bf16.mxu1 %v2339_v60  ;;  %v1947_v60 = vld [vmem:[%s4312_s3 + $0x318] sm:$0xff] }
 0x1b4   :  { %v2375_v58 = vpack.c.bf16 %v1947_v60, %v1945_v51  ;;  %v969_v60 = vrot.slane %v3447_v57, 4 }
 0x1b6   :  { %2342 = vmatpush1.bf16.msra.mxu1 %v2341_v1  ;;  %v1946_v1 = vld [vmem:[%s4312_s3 + $0x310] sm:$0xff] }
 0x1b7   :  { %2344 = vmatprep.subr.bf16.mxu1 %v2343_v4  ;;  %v1949_v4 = vld [vmem:[%s4312_s3 + $0x328] sm:$0xff]  ;;  %v2377_v35 = vpack.c.bf16 %v1946_v1, %v1944_v0  ;;  %v975_v0 = vrot.slane %v916_v50, 4  ;;  %v915_v1 = vld [vmem:[#allocation2 + $0x30] sm:$0xf] }
 0x1b8   :  { %v2379_v5 = vpack.c.bf16 %v1951_v59, %v1949_v4  ;;  %v2405_v4 = vpack.c.bf16 %v1977_v56, %v1975_v55  ;;  %v2003_v55 = vld [vmem:[%s4312_s3 + $0x4c0] sm:$0xff]  ;;  %v2005_v56 = vld [vmem:[%s4312_s3 + $0x4d0] sm:$0xff] }
 0x1ba   :  { %2346 = vmatpush1.bf16.msra.mxu1 %v2345_v6  ;;  %v1950_v6 = vld [vmem:[%s4312_s3 + $0x330] sm:$0xff] }
 0x1bb   :  { %2348 = vmatprep.subr.bf16.mxu1 %v2347_v7  ;;  %v1953_v7 = vld [vmem:[%s4312_s3 + $0x348] sm:$0xff]  ;;  %v2381_v9 = vpack.c.bf16 %v1950_v6, %v1948_v3  ;;  %v973_v6 = vrot.slane %v915_v1, 4 }
 0x1bc   :  { %v2383_v10 = vpack.c.bf16 %v1955_v8, %v1953_v7  ;;  %v1984_v7 = vld [vmem:[%s4312_s3 + $0x428] sm:$0xff]  ;;  %v1986_v8 = vld [vmem:[%s4312_s3 + $0x438] sm:$0xff] }
 0x1bd   :  { %v2015_v1 = vld [vmem:[%s4312_s3 + $0x508] sm:$0xff] }
 0x1be   :  { %2350 = vmatpush1.bf16.msra.mxu1 %v2349_v12  ;;  %v1954_v12 = vld [vmem:[%s4312_s3 + $0x350] sm:$0xff] }
 0x1bf   :  { %2352 = vmatprep.subr.bf16.mxu1 %v2351_v13  ;;  %v1957_v13 = vld [vmem:[%s4312_s3 + $0x368] sm:$0xff]  ;;  %v2385_v15 = vpack.c.bf16 %v1954_v12, %v1952_v11 }
 0x1c0   :  { %v2387_v17 = vpack.c.bf16 %v1959_v14, %v1957_v13  ;;  %v2411_v13 = vpack.c.bf16 %v1986_v8, %v1984_v7  ;;  %v1983_v14 = vld [vmem:[%s4312_s3 + $0x420] sm:$0xff]  ;;  %v2019_v7 = vld [vmem:[%s4312_s3 + $0x528] sm:$0xff]  ;;  %v2021_v8 = vld [vmem:[%s4312_s3 + $0x538] sm:$0xff] }
 0x1c2   :  { %2354 = vmatpush1.bf16.msra.mxu1 %v2353_v19  ;;  %v1958_v19 = vld [vmem:[%s4312_s3 + $0x370] sm:$0xff] }
 0x1c3   :  { %2356 = vmatprep.subr.bf16.mxu1 %v2355_v20  ;;  %v1961_v20 = vld [vmem:[%s4312_s3 + $0x388] sm:$0xff]  ;;  %v2389_v23 = vpack.c.bf16 %v1958_v19, %v1956_v18  ;;  %v1990_v19 = vld [vmem:[%s4312_s3 + $0x458] sm:$0xff] }
 0x1c4   :  { %v2391_v24 = vpack.c.bf16 %v1963_v21, %v1961_v20  ;;  %v1988_v18 = vld [vmem:[%s4312_s3 + $0x448] sm:$0xff] }
 0x1c6   :  { %2358 = vmatpush1.bf16.msra.mxu1 %v2357_v27  ;;  %v1962_v27 = vld [vmem:[%s4312_s3 + $0x390] sm:$0xff] }
 0x1c7   :  { %2360 = vmatprep.subr.bf16.mxu1 %v2359_v29  ;;  %v1965_v29 = vld [vmem:[%s4312_s3 + $0x3a8] sm:$0xff]  ;;  %v2393_v34 = vpack.c.bf16 %v1962_v27, %v1960_v26  ;;  %v1989_v26 = vld [vmem:[%s4312_s3 + $0x450] sm:$0xff] }
 0x1c8   :  { %v2395_v36 = vpack.c.bf16 %v1967_v32, %v1965_v29  ;;  %v1992_v27 = vld [vmem:[%s4312_s3 + $0x468] sm:$0xff]  ;;  %v1994_v29 = vld [vmem:[%s4312_s3 + $0x478] sm:$0xff] }
 0x1c9   :  { %897 = vmatmul.mubr.f32.vlgmr.msra.gmra.mrb[0].mxu1 %v604_v30  ;;  %v1943_v30 = vld [vmem:[%s4312_s3 + $0x2f8] sm:$0xff] }
 0x1ca   :  { %1926 = vmatprep.mubr.msk.f32.mxu1 %vm613_vm1, %v3461_v2  ;;  %2362 = vmatpush1.bf16.msra.mxu1 %v2361_v38  ;;  %v2371_v54 = vpack.c.bf16 %v1943_v30, %v1941_v22  ;;  %v1966_v38 = vld [vmem:[%s4312_s3 + $0x3b0] sm:$0xff]  ;;  %v971_v22 = vrot.slane %v3481_v16, 4  ;;  %v964_v30 = vrot.slane %v3440_v45, 4 }
 0x1cb   :  { %2364 = vmatprep.subr.bf16.mxu1 %v2363_v39  ;;  %v1972_v39 = vld [vmem:[%s4312_s3 + $0x3c8] sm:$0xff]  ;;  %v2397_v42 = vpack.c.bf16 %v1966_v38, %v1964_v37  ;;  %v1993_v37 = vld [vmem:[%s4312_s3 + $0x470] sm:$0xff] }
 0x1cc   :  { %v2399_v43 = vpack.c.bf16 %v1974_v40, %v1972_v39  ;;  %v965_v51 = vsel %vm962_vm3, %v963_v47, %v964_v30  ;;  %v970_v3 = vsel %vm962_vm3, %v964_v30, %v969_v60  ;;  %v1996_v38 = vld [vmem:[%s4312_s3 + $0x488] sm:$0xff]  ;;  %v1998_v39 = vld [vmem:[%s4312_s3 + $0x498] sm:$0xff] }
 0x1cd   :  { %903 = vmatmul.mubr.f32.gmra.mrb[2].mxu1 %v3440_v45  ;;  %v2423_v41 = vpack.c.bf16 %v1998_v39, %v1996_v38  ;;  %v2004_v30 = vld [vmem:[%s4312_s3 + $0x4c8] sm:$0xff]  ;;  %v2029_v38 = vld [vmem:[%s4312_s3 + $0x578] sm:$0xff] }
 0x1ce   :  { %1927 = vmatprep.mubr.msk.f32.mxu1 %vm613_vm1, %v3481_v16  ;;  %2366 = vmatpush1.bf16.msra.mxu1 %v2365_v44  ;;  %v1971_v44 = vld [vmem:[%s4312_s3 + $0x3c0] sm:$0xff] }
 0x1cf   :  { %2368 = vmatprep.subr.bf16.mxu1 %v2367_v46  ;;  %v1973_v46 = vld [vmem:[%s4312_s3 + $0x3d0] sm:$0xff] }
 0x1d1   :  { %909 = vmatmul.mubr.f32.gmra.mrb[6].mxu1 %v3447_v57 }
 0x1d2   :  { %2370 = vmatpush1.bf16.msra.mxu1 %v2369_v53  ;;  %1968 = vmatprep.mubr.msk.f32.mxu1 %vm613_vm1, %v968_v61  ;;  %v2401_v53 = vpack.c.bf16 %v1973_v46, %v1971_v44  ;;  %v1980_v61 = vld [vmem:[%s4312_s3 + $0x408] sm:$0xff]  ;;  %v2002_v46 = vld [vmem:[%s4312_s3 + $0x4b8] sm:$0xff] }
 0x1d3   :  { %2372 = vmatprep.subr.bf16.mxu1 %v2371_v54  ;;  %v2403_v54 = vpack.c.bf16 %v1978_v49, %v1976_v48  ;;  %v2000_v44 = vld [vmem:[%s4312_s3 + $0x4a8] sm:$0xff]  ;;  %v1999_v49 = vld [vmem:[%s4312_s3 + $0x4a0] sm:$0xff] }
 0x1d4   :  { %v2427_v48 = vpack.c.bf16 %v2002_v46, %v2000_v44  ;;  %v2031_v46 = vld [vmem:[%s4312_s3 + $0x588] sm:$0xff] }
 0x1d6   :  { %2374 = vmatpush1.bf16.msra.mxu1 %v2373_v62  ;;  %v1982_v62 = vld [vmem:[%s4312_s3 + $0x418] sm:$0xff] }
 0x1d7   :  { %2376 = vmatprep.subr.bf16.mxu1 %v2375_v58  ;;  %v972_v58 = vsel %vm962_vm3, %v967_v52, %v971_v22  ;;  %v2407_v59 = vpack.c.bf16 %v1982_v62, %v1980_v61  ;;  %v1072_v52 = vld [vmem:[#allocation2 + $0x8] sm:$0xc0]  ;;  %v2433_v61 = vpack.c.bf16 %v2005_v56, %v2003_v55  ;;  %v2034_v55 = vld [vmem:[%s4312_s3 + $0x5a0] sm:$0xff]  ;;  %v2036_v56 = vld [vmem:[%s4312_s3 + $0x5b0] sm:$0xff] }
 0x1d8   :  { %v1124_v12 = vrot.slane %v1072_v52, 6 }
 0x1da   :  { %2378 = vmatpush1.bf16.msra.mxu1 %v2377_v35  ;;  %v1979_v35 = vld [vmem:[%s4312_s3 + $0x400] sm:$0xff] }
 0x1db   :  { %2380 = vmatprep.subr.bf16.mxu1 %v2379_v5  ;;  %v1981_v5 = vld [vmem:[%s4312_s3 + $0x410] sm:$0xff] }
 0x1dc   :  { %v2409_v11 = vpack.c.bf16 %v1981_v5, %v1979_v35 }
 0x1de   :  { %2382 = vmatpush1.bf16.msra.mxu1 %v2381_v9  ;;  %v976_v9 = vsel %vm962_vm3, %v971_v22, %v975_v0  ;;  %v2001_v22 = vld [vmem:[%s4312_s3 + $0x4b0] sm:$0xff] }
 0x1df   :  { %2384 = vmatprep.subr.bf16.mxu1 %v2383_v10  ;;  %v1125_v10 = vrot.slane %v3461_v2, 6  ;;  %v2429_v50 = vpack.c.bf16 %v2001_v22, %v1999_v49  ;;  %v2009_v0 = vld [vmem:[%s4312_s3 + $0x4f0] sm:$0xff]  ;;  %v2030_v22 = vld [vmem:[%s4312_s3 + $0x580] sm:$0xff] }
 0x1e1   :  { %v1126_v20 = vsel %vm1120_vm4, %v1124_v12, %v1125_v10 }
 0x1e2   :  { %2386 = vmatpush1.bf16.msra.mxu1 %v2385_v15  ;;  %v1985_v15 = vld [vmem:[%s4312_s3 + $0x430] sm:$0xff] }
 0x1e3   :  { %2388 = vmatprep.subr.bf16.mxu1 %v2387_v17  ;;  %v974_v17 = vsel %vm962_vm3, %v969_v60, %v973_v6  ;;  %v2413_v21 = vpack.c.bf16 %v1985_v15, %v1983_v14  ;;  %v2010_v60 = vld [vmem:[%s4312_s3 + $0x4f8] sm:$0xff]  ;;  %v2016_v6 = vld [vmem:[%s4312_s3 + $0x510] sm:$0xff]  ;;  %v2443_v14 = vpack.c.bf16 %v2021_v8, %v2019_v7  ;;  %v2018_v15 = vld [vmem:[%s4312_s3 + $0x520] sm:$0xff] }
 0x1e6   :  { %2390 = vmatpush1.bf16.msra.mxu1 %v2389_v23  ;;  %v2415_v23 = vpack.c.bf16 %v1990_v19, %v1988_v18  ;;  %v1127_v19 = vrot.slane %v3447_v57, 6 }
 0x1e7   :  { %2392 = vmatprep.subr.bf16.mxu1 %v2391_v24  ;;  %v1987_v24 = vld [vmem:[%s4312_s3 + $0x440] sm:$0xff] }
 0x1e8   :  { %v2417_v32 = vpack.c.bf16 %v1989_v26, %v1987_v24  ;;  %v1073_v26 = vld [vmem:[#allocation2 + $0x30] sm:$0x3f] }
 0x1ea   :  { %2394 = vmatpush1.bf16.msra.mxu1 %v2393_v34  ;;  %v2419_v34 = vpack.c.bf16 %v1994_v29, %v1992_v27 }
 0x1eb   :  { %2396 = vmatprep.subr.bf16.mxu1 %v2395_v36  ;;  %v1991_v36 = vld [vmem:[%s4312_s3 + $0x460] sm:$0xff] }
 0x1ec   :  { %v2421_v40 = vpack.c.bf16 %v1993_v37, %v1991_v36  ;;  %v1131_v37 = vrot.slane %v1073_v26, 6 }
 0x1ee   :  { %2398 = vmatpush1.bf16.msra.mxu1 %v2397_v42  ;;  %v1995_v42 = vld [vmem:[%s4312_s3 + $0x480] sm:$0xff]  ;;  %v1132_v44 = vsel %vm1120_vm4, %v1127_v19, %v1131_v37 }
 0x1ef   :  { %2400 = vmatprep.subr.bf16.mxu1 %v2399_v43  ;;  %v1997_v43 = vld [vmem:[%s4312_s3 + $0x490] sm:$0xff] }
 0x1f0   :  { %v2425_v47 = vpack.c.bf16 %v1997_v43, %v1995_v42  ;;  %v2026_v42 = vld [vmem:[%s4312_s3 + $0x560] sm:$0xff]  ;;  %v2028_v43 = vld [vmem:[%s4312_s3 + $0x570] sm:$0xff] }
 0x1f1   :  { %1051 = vmatmul.mubr.f32.vlgmr.msra.gmra.mrb[0].mxu1 %v965_v51  ;;  %v2008_v51 = vld [vmem:[%s4312_s3 + $0x4e8] sm:$0xff] }
 0x1f2   :  { %1969 = vmatprep.mubr.msk.f32.mxu1 %vm613_vm1, %v972_v58  ;;  %2402 = vmatpush1.bf16.msra.mxu1 %v2401_v53  ;;  %v2006_v53 = vld [vmem:[%s4312_s3 + $0x4d8] sm:$0xff]  ;;  %v2435_v62 = vpack.c.bf16 %v2010_v60, %v2008_v51  ;;  %v2007_v58 = vld [vmem:[%s4312_s3 + $0x4e0] sm:$0xff]  ;;  %v2039_v51 = vld [vmem:[%s4312_s3 + $0x5c8] sm:$0xff] }
 0x1f3   :  { %2404 = vmatprep.subr.bf16.mxu1 %v2403_v54  ;;  %v2431_v54 = vpack.c.bf16 %v2006_v53, %v2004_v30  ;;  %v2437_v35 = vpack.c.bf16 %v2009_v0, %v2007_v58  ;;  %v2032_v30 = vld [vmem:[%s4312_s3 + $0x590] sm:$0xff]  ;;  %v2035_v53 = vld [vmem:[%s4312_s3 + $0x5a8] sm:$0xff]  ;;  %v2041_v60 = vld [vmem:[%s4312_s3 + $0x5d8] sm:$0xff] }
 0x1f4   :  { %v2038_v58 = vld [vmem:[%s4312_s3 + $0x5c0] sm:$0xff]  ;;  %v2040_v0 = vld [vmem:[%s4312_s3 + $0x5d0] sm:$0xff] }
 0x1f5   :  { %1057 = vmatmul.mubr.f32.gmra.mrb[2].mxu1 %v970_v3  ;;  %v2014_v3 = vld [vmem:[%s4312_s3 + $0x500] sm:$0xff] }
 0x1f6   :  { %1970 = vmatprep.mubr.msk.f32.mxu1 %vm613_vm1, %v976_v9  ;;  %2406 = vmatpush1.bf16.msra.mxu1 %v2405_v4  ;;  %v2017_v4 = vld [vmem:[%s4312_s3 + $0x518] sm:$0xff]  ;;  %v1129_v9 = vrot.slane %v3481_v16, 6  ;;  %v2441_v12 = vpack.c.bf16 %v2016_v6, %v2014_v3  ;;  %v2044_v3 = vld [vmem:[%s4312_s3 + $0x5f0] sm:$0xff]  ;;  %v2047_v6 = vld [vmem:[%s4312_s3 + $0x608] sm:$0xff] }
 0x1f7   :  { %2408 = vmatprep.subr.bf16.mxu1 %v2407_v59  ;;  %v1071_v59 = vld [vmem:[#allocation2] sm:$0xc0]  ;;  %v2439_v5 = vpack.c.bf16 %v2017_v4, %v2015_v1  ;;  %v2043_v1 = vld [vmem:[%s4312_s3 + $0x5e8] sm:$0xff]  ;;  %v2045_v4 = vld [vmem:[%s4312_s3 + $0x5f8] sm:$0xff] }
 0x1f8   :  { %v1121_v52 = vrot.slane %v1071_v59, 6  ;;  %v2465_v59 = vpack.c.bf16 %v2040_v0, %v2038_v58 }
 0x1f9   :  { %1063 = vmatmul.mubr.f32.gmra.mrb[8].mxu1 %v974_v17  ;;  %v2020_v17 = vld [vmem:[%s4312_s3 + $0x530] sm:$0xff] }
 0x1fa   :  { %2410 = vmatpush1.bf16.msra.mxu1 %v2409_v11  ;;  %2011 = vmatprep.mubr.msk.f32.mxu1 %vm613_vm1, %v1126_v20  ;;  %v1122_v11 = vrot.slane %v3440_v45, 6  ;;  %v2023_v20 = vld [vmem:[%s4312_s3 + $0x548] sm:$0xff]  ;;  %v2445_v27 = vpack.c.bf16 %v2020_v17, %v2018_v15  ;;  %v2050_v17 = vld [vmem:[%s4312_s3 + $0x620] sm:$0xff] }
 0x1fb   :  { %2412 = vmatprep.subr.bf16.mxu1 %v2411_v13  ;;  %v1074_v13 = vld [vmem:[#allocation2 + $0x38] sm:$0x3f] }
 0x1fc   :  { %v1123_v18 = vsel %vm1120_vm4, %v1121_v52, %v1122_v11  ;;  %v1133_v24 = vrot.slane %v1074_v13, 6  ;;  %v1128_v36 = vsel %vm1120_vm4, %v1122_v11, %v1127_v19  ;;  %v2049_v52 = vld [vmem:[%s4312_s3 + $0x618] sm:$0xff]  ;;  %v2048_v11 = vld [vmem:[%s4312_s3 + $0x610] sm:$0xff] }
 0x1fd   :  { %v2471_v8 = vpack.c.bf16 %v2049_v52, %v2047_v6  ;;  %v2053_v13 = vld [vmem:[%s4312_s3 + $0x638] sm:$0xff]  ;;  %v1463_v6 = vld [vmem:[%s4314_s5 + $0x40] sm:$0xff]  ;;  %v1464_v52 = vld [vmem:[%s4314_s5 + $0x48] sm:$0xff] }
 0x1fe   :  { %2414 = vmatpush1.bf16.msra.mxu1 %v2413_v21  ;;  %v2025_v21 = vld [vmem:[%s4312_s3 + $0x558] sm:$0xff]  ;;  %v1134_v39 = vsel %vm1120_vm4, %v1129_v9, %v1133_v24 }
 0x1ff   :  { %2416 = vmatprep.subr.bf16.mxu1 %v2415_v23  ;;  %v1130_v23 = vsel %vm1120_vm4, %v1125_v10, %v1129_v9  ;;  %v2447_v29 = vpack.c.bf16 %v2025_v21, %v2023_v20  ;;  %v2027_v10 = vld [vmem:[%s4312_s3 + $0x568] sm:$0xff]  ;;  %v2046_v9 = vld [vmem:[%s4312_s3 + $0x600] sm:$0xff]  ;;  %v1230_v20 = vld [vmem:[#allocation2 + $0x38] sm:$0xff] }
 0x202   :  { %2418 = vmatpush1.bf16.msra.mxu1 %v2417_v32  ;;  %v2022_v32 = vld [vmem:[%s4312_s3 + $0x540] sm:$0xff] }
 0x203   :  { %2420 = vmatprep.subr.bf16.mxu1 %v2419_v34  ;;  %v2024_v34 = vld [vmem:[%s4312_s3 + $0x550] sm:$0xff] }
 0x206   :  { %2422 = vmatpush1.bf16.msra.mxu1 %v2421_v40  ;;  %v2449_v40 = vpack.c.bf16 %v2024_v34, %v2022_v32 }
 0x207   :  { %2424 = vmatprep.subr.bf16.mxu1 %v2423_v41  ;;  %v2451_v41 = vpack.c.bf16 %v2029_v38, %v2027_v10 }
 0x20a   :  { %2426 = vmatpush1.bf16.msra.mxu1 %v2425_v47  ;;  %v2033_v47 = vld [vmem:[%s4312_s3 + $0x598] sm:$0xff] }
 0x20b   :  { %2428 = vmatprep.subr.bf16.mxu1 %v2427_v48  ;;  %v2453_v48 = vpack.c.bf16 %v2028_v43, %v2026_v42  ;;  %v2455_v49 = vpack.c.bf16 %v2033_v47, %v2031_v46  ;;  %v1472_v42 = vld [vmem:[%s4314_s5 + $0x88] sm:$0xff]  ;;  %v1455_v43 = vld [vmem:[%s4314_s5] sm:$0xff]  ;;  %v1473_v47 = vld [vmem:[%s4314_s5 + $0x90] sm:$0xff] }
 0x20c   :  { %v1456_v46 = vld [vmem:[%s4314_s5 + $0x8] sm:$0xff] }
 0x20e   :  { %2430 = vmatpush1.bf16.msra.mxu1 %v2429_v50  ;;  %v2037_v50 = vld [vmem:[%s4312_s3 + $0x5b8] sm:$0xff] }
 0x20f   :  { %2432 = vmatprep.subr.bf16.mxu1 %v2431_v54  ;;  %v2459_v54 = vpack.c.bf16 %v2037_v50, %v2035_v53  ;;  %v1457_v53 = vld [vmem:[%s4314_s5 + $0x10] sm:$0xff]  ;;  %v1458_v50 = vld [vmem:[%s4314_s5 + $0x18] sm:$0xff] }
 0x212   :  { %2434 = vmatpush1.bf16.msra.mxu1 %v2433_v61  ;;  %v2461_v61 = vpack.c.bf16 %v2036_v56, %v2034_v55  ;;  %v2485_v55 = vpack.c.bf16 %v1458_v50, %v1457_v53  ;;  %v1523_v50 = vld [vmem:[%s4314_s5 + $0x220] sm:$0xff] }
 0x213   :  { %2436 = vmatprep.subr.bf16.mxu1 %v2435_v62  ;;  %v2463_v62 = vpack.c.bf16 %v2041_v60, %v2039_v51  ;;  %v1459_v51 = vld [vmem:[%s4314_s5 + $0x20] sm:$0xff]  ;;  %v1460_v60 = vld [vmem:[%s4314_s5 + $0x28] sm:$0xff] }
 0x214   :  { %v2489_v58 = vpack.c.bf16 %v1460_v60, %v1459_v51 }
 0x216   :  { %2438 = vmatpush1.bf16.msra.mxu1 %v2437_v35  ;;  %v2467_v35 = vpack.c.bf16 %v2045_v4, %v2043_v1  ;;  %v1461_v1 = vld [vmem:[%s4314_s5 + $0x30] sm:$0xff]  ;;  %v1462_v4 = vld [vmem:[%s4314_s5 + $0x38] sm:$0xff] }
 0x217   :  { %2440 = vmatprep.subr.bf16.mxu1 %v2439_v5  ;;  %v2042_v5 = vld [vmem:[%s4312_s3 + $0x5e0] sm:$0xff] }
 0x218   :  { %v2469_v7 = vpack.c.bf16 %v2044_v3, %v2042_v5  ;;  %v2493_v5 = vpack.c.bf16 %v1462_v4, %v1461_v1  ;;  %v1487_v4 = vld [vmem:[%s4314_s5 + $0x100] sm:$0xff] }
 0x219   :  { %1209 = vmatmul.mubr.f32.vlgmr.msra.gmra.mrb[0].mxu1 %v1123_v18  ;;  %v2052_v18 = vld [vmem:[%s4312_s3 + $0x630] sm:$0xff] }
 0x21a   :  { %2012 = vmatprep.mubr.msk.f32.mxu1 %vm613_vm1, %v1130_v23  ;;  %2442 = vmatpush1.bf16.msra.mxu1 %v2441_v12  ;;  %v2051_v12 = vld [vmem:[%s4312_s3 + $0x628] sm:$0xff]  ;;  %v2477_v19 = vpack.c.bf16 %v2052_v18, %v2050_v17 }
 0x21b   :  { %2444 = vmatprep.subr.bf16.mxu1 %v2443_v14  ;;  %v2473_v14 = vpack.c.bf16 %v2048_v11, %v2046_v9  ;;  %v2475_v15 = vpack.c.bf16 %v2053_v13, %v2051_v12  ;;  %v2497_v9 = vpack.c.bf16 %v1464_v52, %v1463_v6  ;;  %v1465_v12 = vld [vmem:[%s4314_s5 + $0x50] sm:$0xff]  ;;  %v1466_v13 = vld [vmem:[%s4314_s5 + $0x58] sm:$0xff] }
 0x21c   :  { %v2501_v17 = vpack.c.bf16 %v1466_v13, %v1465_v12 }
 0x21d   :  { %1215 = vmatmul.mubr.f32.gmra.mrb[2].mxu1 %v1128_v36 }
 0x21e   :  { %2013 = vmatprep.mubr.msk.f32.mxu1 %vm613_vm1, %v1134_v39  ;;  %2446 = vmatpush1.bf16.msra.mxu1 %v2445_v27 }
 0x21f   :  { %2448 = vmatprep.subr.bf16.mxu1 %v2447_v29 }
 0x221   :  { %1221 = vmatmul.mubr.f32.gmra.mrb[10].mxu1 %v1132_v44 }
 0x222   :  { %2450 = vmatpush1.bf16.msra.mxu1 %v2449_v40  ;;  %2054 = vmatprep.mubr.msk.f32.mxu1 %vm613_vm1, %v3461_v2  ;;  %v2457_v2 = vpack.c.bf16 %v2032_v30, %v2030_v22  ;;  %v2481_v22 = vpack.c.bf16 %v1456_v46, %v1455_v43  ;;  %v1521_v43 = vld [vmem:[%s4314_s5 + $0x210] sm:$0xff] }
 0x223   :  { %2452 = vmatprep.subr.bf16.mxu1 %v2451_v41 }
 0x226   :  { %2454 = vmatpush1.bf16.msra.mxu1 %v2453_v48  ;;  %v1474_v48 = vld [vmem:[%s4314_s5 + $0x98] sm:$0xff] }
 0x227   :  { %2456 = vmatprep.subr.bf16.mxu1 %v2455_v49  ;;  %v2688_v49 = vmov 0.0|0.0   ;;  %v2483_v30 = vpack.c.bf16 %v1474_v48, %v1473_v47  ;;  %v1522_v47 = vld [vmem:[%s4314_s5 + $0x218] sm:$0xff] }
 0x22a   :  { %2458 = vmatpush1.bf16.msra.mxu1 %v2457_v2  ;;  %v1475_v2 = vld [vmem:[%s4314_s5 + $0xa0] sm:$0xff] }
 0x22b   :  { %2460 = vmatprep.subr.bf16.mxu1 %v2459_v54  ;;  %v1476_v54 = vld [vmem:[%s4314_s5 + $0xa8] sm:$0xff] }
 0x22c   :  { %v2487_v56 = vpack.c.bf16 %v1476_v54, %v1475_v2  ;;  %v1524_v54 = vld [vmem:[%s4314_s5 + $0x228] sm:$0xff] }
 0x22e   :  { %2462 = vmatpush1.bf16.msra.mxu1 %v2461_v61  ;;  %v1477_v61 = vld [vmem:[%s4314_s5 + $0xb0] sm:$0xff] }
 0x22f   :  { %2464 = vmatprep.subr.bf16.mxu1 %v2463_v62  ;;  %v1478_v62 = vld [vmem:[%s4314_s5 + $0xb8] sm:$0xff] }
 0x230   :  { %v2491_v0 = vpack.c.bf16 %v1478_v62, %v1477_v61 }
 0x232   :  { %2466 = vmatpush1.bf16.msra.mxu1 %v2465_v59  ;;  %v1479_v59 = vld [vmem:[%s4314_s5 + $0xc0] sm:$0xff] }
 0x233   :  { %2468 = vmatprep.subr.bf16.mxu1 %v2467_v35  ;;  %v1480_v35 = vld [vmem:[%s4314_s5 + $0xc8] sm:$0xff] }
 0x234   :  { %v2495_v3 = vpack.c.bf16 %v1480_v35, %v1479_v59  ;;  %v1488_v59 = vld [vmem:[%s4314_s5 + $0x108] sm:$0xff] }
 0x236   :  { %2470 = vmatpush1.bf16.msra.mxu1 %v2469_v7  ;;  %v1481_v7 = vld [vmem:[%s4314_s5 + $0xd0] sm:$0xff] }
 0x237   :  { %2472 = vmatprep.subr.bf16.mxu1 %v2471_v8  ;;  %v1482_v8 = vld [vmem:[%s4314_s5 + $0xd8] sm:$0xff] }
 0x238   :  { %v2499_v11 = vpack.c.bf16 %v1482_v8, %v1481_v7  ;;  %v2513_v8 = vpack.c.bf16 %v1488_v59, %v1487_v4  ;;  %v1747_v59 = vld [vmem:[%s4316_s7] sm:$0xff] }
 0x23a   :  { %2474 = vmatpush1.bf16.msra.mxu1 %v2473_v14  ;;  %v1483_v14 = vld [vmem:[%s4314_s5 + $0xe0] sm:$0xff] }
 0x23b   :  { %2476 = vmatprep.subr.bf16.mxu1 %v2475_v15  ;;  %v1484_v15 = vld [vmem:[%s4314_s5 + $0xe8] sm:$0xff] }
 0x23c   :  { %v2503_v18 = vpack.c.bf16 %v1484_v15, %v1483_v14  ;;  %v1489_v14 = vld [vmem:[%s4314_s5 + $0x110] sm:$0xff]  ;;  %v1490_v15 = vld [vmem:[%s4314_s5 + $0x118] sm:$0xff] }
 0x23e   :  { %2478 = vmatpush1.bf16.msra.mxu1 %v2477_v19  ;;  %v1467_v19 = vld [vmem:[%s4314_s5 + $0x60] sm:$0xff] }
 0x23f   :  { %2543 = vmatprep.subr.bf16.mxu1 %v2688_v49 }
 0x241   :  { %1340 = vmatmul.mubr.f32.vlgmr.msra.gmra.mrb[0].mxu1 %v3440_v45  ;;  %v1360_v45 = vld [vmem:[%s4313_s4] sm:$0x3]  ;;  %s2687_s4 = smov 108  }
 0x242   :  { %2055 = vmatprep.mubr.msk.f32.mxu1 %vm613_vm1, %v3481_v16  ;;  %v1369_v16 = vrot.slane %v1360_v45, %v205_v31  ;;  %v1471_v31 = vld [vmem:[%s4314_s5 + $0x80] sm:$0xff] }
 0x243   :  { %v2479_v44 = vpack.c.bf16 %v1472_v42, %v1471_v31 }
 0x245   :  { %1346 = vmatmul.mubr.f32.gmra.mrb[2].mxu1 %v3447_v57  ;;  %v1365_v57 = vrot.slane %v1360_v45, %v201_v28  ;;  %2480 = vmatprep.subr.bf16.mxu0 %v2479_v44  ;;  %v1520_v45 = vld [vmem:[%s4314_s5 + $0x208] sm:$0xff] }
 0x246   :  { %2056 = vmatprep.mubr.msk.f32.mxu1 %vm613_vm1, %v1230_v20  ;;  %2482 = vmatpush3.bf16.msra.mxu0 %v2481_v22  ;;  %v1468_v20 = vld [vmem:[%s4314_s5 + $0x68] sm:$0xff] }
 0x247   :  { %2484 = vmatprep.subr.bf16.mxu0 %v2483_v30 }
 0x249   :  { %1352 = vmatmul.mubr.f32.gmra.mrb[12].mxu1 %v610_v33 }
 0x24a   :  { %2486 = vmatpush3.bf16.msra.mxu0 %v2485_v55  ;;  %v2550_v55 = vpack.c.bf16 %v1524_v54, %v1523_v50  ;;  %v1500_v54 = vld [vmem:[%s4314_s5 + $0x168] sm:$0xff] }
 0x24b   :  { %2488 = vmatprep.subr.bf16.mxu0 %v2487_v56 }
 0x24e   :  { %2490 = vmatpush3.bf16.msra.mxu0 %v2489_v58 }
 0x24f   :  { %2492 = vmatprep.subr.bf16.mxu0 %v2491_v0 }
 0x252   :  { %2494 = vmatpush3.bf16.msra.mxu0 %v2493_v5  ;;  %v1505_v5 = vld [vmem:[%s4314_s5 + $0x190] sm:$0xff] }
 0x253   :  { %2496 = vmatprep.subr.bf16.mxu0 %v2495_v3  ;;  %v1506_v3 = vld [vmem:[%s4314_s5 + $0x198] sm:$0xff] }
 0x254   :  { %v2515_v13 = vpack.c.bf16 %v1506_v3, %v1505_v5  ;;  %v1748_v5 = vld [vmem:[%s4316_s7 + $0x8] sm:$0xff] }
 0x255   :  { %v2553_v3 = vpack.c.bf16 %v1748_v5, %v1747_v59 }
 0x256   :  { %2498 = vmatpush3.bf16.msra.mxu0 %v2497_v9 }
 0x257   :  { %2500 = vmatprep.subr.bf16.mxu0 %v2499_v11 }
 0x25a   :  { %2502 = vmatpush3.bf16.msra.mxu0 %v2501_v17 }
 0x25b   :  { %2504 = vmatprep.subr.bf16.mxu0 %v2503_v18  ;;  %v1507_v18 = vld [vmem:[%s4314_s5 + $0x1a0] sm:$0xff] }
 0x27c   :  { %v822_v21 = vpop.f32.mrb[4].mxu1 }
 0x27d   :  { %v823_v23 = vpop.f32.mrb[5].mxu1  ;;  %v1485_v21 = vld [vmem:[%s4314_s5 + $0xf0] sm:$0xff] }
 0x27e   :  { %v1486_v23 = vld [vmem:[%s4314_s5 + $0xf8] sm:$0xff] }
 0x2a4   :  { %v910_v24 = vpop.f32.mrb[6].mxu1 }
 0x2a5   :  { %v911_v26 = vpop.f32.mrb[7].mxu1  ;;  %v2505_v24 = vpack.c.bf16 %v1468_v20, %v1467_v19  ;;  %v1508_v19 = vld [vmem:[%s4314_s5 + $0x1a8] sm:$0xff] }
 0x2a6   :  { %v2507_v26 = vpack.c.bf16 %v1486_v23, %v1485_v21  ;;  %v2517_v23 = vpack.c.bf16 %v1490_v15, %v1489_v14 }
 0x2a7   :  { %2506 = vmatpush3.bf16.msra.mxu0 %v2505_v24 }
 0x2a8   :  { %2508 = vmatprep.subr.bf16.mxu0 %v2507_v26  ;;  %v2519_v26 = vpack.c.bf16 %v1508_v19, %v1507_v18 }
 0x2cc   :  { %v1064_v27 = vpop.f32.mrb[8].mxu1 }
 0x2cd   :  { %v1065_v29 = vpop.f32.mrb[9].mxu1  ;;  %v1469_v27 = vld [vmem:[%s4314_s5 + $0x70] sm:$0xff] }
 0x2ce   :  { %v1470_v29 = vld [vmem:[%s4314_s5 + $0x78] sm:$0xff] }
 0x2f4   :  { %v1222_v32 = vpop.f32.mrb[10].mxu1 }
 0x2f5   :  { %v1223_v34 = vpop.f32.mrb[11].mxu1  ;;  %v2509_v32 = vpack.c.bf16 %v1470_v29, %v1469_v27  ;;  %v1491_v27 = vld [vmem:[%s4314_s5 + $0x120] sm:$0xff]  ;;  %v1492_v29 = vld [vmem:[%s4314_s5 + $0x128] sm:$0xff] }
 0x2f6   :  { %v1519_v34 = vld [vmem:[%s4314_s5 + $0x200] sm:$0xff] }
 0x2f7   :  { %2510 = vmatpush3.bf16.msra.mxu0 %v2509_v32 }
 0x314   :  { %v1341_v63 = vpop.f32.mrb[0].mxu1 }
 0x315   :  { %v4006_v33 = vadd.f32 %v1365_v57, %v1341_v63  ;;  %v1343_v36 = vpop.f32.mrb[1].mxu1 }
 0x316   :  { %v4008_v37 = vadd.f32 %v1369_v16, %v1343_v36 }
 0x318   :  { %v1347_v10 = vpop.f32.mrb[2].mxu1  ;;  %v2649_v38 = vpack.i.bf16 %v4008_v37, %v4006_v33 }
 0x319   :  { %v1349_v39 = vpop.f32.mrb[3].mxu1  ;;  %v4014_v41 = vadd.f32 %v1365_v57, %v1347_v10 }
 0x31a   :  { %v4012_v40 = vadd.f32 %v1369_v16, %v1349_v39  ;;  %2650 = vrot.lane.b32.xlu0 %v2649_v38, %s2687_s4  ;;  %v2544_v16 = vpack.c.bf16 %v1520_v45, %v1519_v34  ;;  %v1503_v38 = vld [vmem:[%s4314_s5 + $0x180] sm:$0xff]  ;;  %v1504_v39 = vld [vmem:[%s4314_s5 + $0x188] sm:$0xff]  ;;  %v1509_v45 = vld [vmem:[%s4314_s5 + $0x1b0] sm:$0xff] }
 0x31b   :  { %v2511_v42 = vpack.c.bf16 %v1504_v39, %v1503_v38  ;;  %v1493_v38 = vld [vmem:[%s4314_s5 + $0x130] sm:$0xff]  ;;  %v1494_v39 = vld [vmem:[%s4314_s5 + $0x138] sm:$0xff] }
 0x31c   :  { %1386 = vrot.lane.b32.xlu1 %v4012_v40, %s2687_s4  ;;  %v1353_v25 = vpop.f32.mrb[12].mxu1  ;;  %2545 = vmatpush3.bf16.msra.mxu1 %v2544_v16 }
 0x31d   :  { %v1354_v28 = vpop.f32.mrb[13].mxu1  ;;  %2546 = vmatprep.subr.bf16.mxu1 %v2688_v49  ;;  %2512 = vmatprep.subr.bf16.mxu0 %v2511_v42 }
 0x31e   :  { %1384 = vrot.lane.b32.xlu0 %v4014_v41, %s2687_s4 }
 0x38c   :  { %v2651_v57 = vpop.permute.xlu0 %2650 }
 0x38d   :  { %v2653_v63 = vunpack.i.h.bf16 %v2651_v57  ;;  %v2652_v36 = vunpack.i.l.bf16 %v2651_v57  ;;  %v1510_v57 = vld [vmem:[%s4314_s5 + $0x1b8] sm:$0xff] }
 0x38e   :  { %v1387_v10 = vpop.permute.xlu1 %1386 }
 0x38f   :  { %v1396_v25 = vmax.f32 %v4008_v37, %v2653_v63  ;;  %v1398_v28 = vmax.f32 %v4012_v40, %v1387_v10  ;;  %v1389_v31 = vsel %vm1388_vm5, %v2652_v36, %v2653_v63  ;;  %v2547_v40 = vpack.c.bf16 %v1522_v47, %v1521_v43  ;;  %v1495_v43 = vld [vmem:[%s4314_s5 + $0x140] sm:$0xff]  ;;  %v1514_v47 = vld [vmem:[%s4314_s5 + $0x1d8] sm:$0xff] }
 0x390   :  { %v1395_v44 = vmax.f32 %v4006_v33, %v1389_v31  ;;  %v1385_v46 = vpop.permute.xlu0 %1384  ;;  %v2521_v36 = vpack.c.bf16 %v1492_v29, %v1491_v27  ;;  %v2525_v31 = vpack.c.bf16 %v1494_v39, %v1493_v38 }
 0x391   :  { %v1390_v37 = vsel %vm1388_vm5, %v1385_v46, %v1387_v10  ;;  %v1402_v48 = vrot.slane %v1396_v25, 2  ;;  %v1410_v22 = vrot.slane %v1398_v28, 2  ;;  %2548 = vmatpush3.bf16.msra.mxu1 %v2547_v40  ;;  %v2523_v10 = vpack.c.bf16 %v1510_v57, %v1509_v45  ;;  %v1513_v46 = vld [vmem:[%s4314_s5 + $0x1d0] sm:$0xff] }
 0x392   :  { %v1397_v30 = vmax.f32 %v4014_v41, %v1390_v37  ;;  %v1401_v53 = vrot.slane %v1395_v44, 2  ;;  %2549 = vmatprep.subr.bf16.mxu1 %v2688_v49  ;;  %v2690_v41 = vmov 0.0   ;;  %v2531_v40 = vpack.c.bf16 %v1514_v47, %v1513_v46 }
 0x393   :  { %v1406_v56 = vmax.f32 %v1396_v25, %v1402_v48  ;;  %v1414_v51 = vmax.f32 %v1398_v28, %v1410_v22  ;;  %2159 = vmatprep.mubr.msk.f32.mxu1 %vm2689_vm6, %v2690_v41  ;;  %v1511_v25 = vld [vmem:[%s4314_s5 + $0x1c0] sm:$0xff]  ;;  %v1512_v28 = vld [vmem:[%s4314_s5 + $0x1c8] sm:$0xff]  ;;  %v1497_v48 = vld [vmem:[%s4314_s5 + $0x150] sm:$0xff] }
 0x394   :  { %v1409_v33 = vrot.slane %v1397_v30, 2  ;;  %v1405_v2 = vmax.f32 %v1395_v44, %v1401_v53  ;;  %v2527_v42 = vpack.c.bf16 %v1512_v28, %v1511_v25  ;;  %v1496_v44 = vld [vmem:[%s4314_s5 + $0x148] sm:$0xff]  ;;  %v1498_v22 = vld [vmem:[%s4314_s5 + $0x158] sm:$0xff] }
 0x395   :  { %2551 = vmatpush3.bf16.msra.mxu1 %v2550_v55  ;;  %v1418_v58 = vrot.slane %v1406_v56, 4  ;;  %v1438_v1 = vrot.slane %v1414_v51, 4  ;;  %v2529_v37 = vpack.c.bf16 %v1496_v44, %v1495_v43  ;;  %v1516_v53 = vld [vmem:[%s4314_s5 + $0x1e8] sm:$0xff]  ;;  %v2533_v50 = vpack.c.bf16 %v1498_v22, %v1497_v48  ;;  %v1517_v55 = vld [vmem:[%s4314_s5 + $0x1f0] sm:$0xff] }
 0x396   :  { %v1413_v60 = vmax.f32 %v1397_v30, %v1409_v33  ;;  %v1417_v61 = vrot.slane %v1405_v2, 4  ;;  %2552 = vmatprep.subr.bf16.mxu1 %v2688_v49  ;;  %v1450_v9 = vmax.f32 %v1405_v2, 0.0  ;;  %v1515_v30 = vld [vmem:[%s4314_s5 + $0x1e0] sm:$0xff] }
 0x397   :  { %v2535_v33 = vpack.c.bf16 %v1516_v53, %v1515_v30  ;;  %v1499_v2 = vld [vmem:[%s4314_s5 + $0x160] sm:$0xff] }
 0x398   :  { %1419 = vrot.lane.b32.xlu1 %v1417_v61, %s2691_s1  ;;  %v2654_v62 = vpack.i.bf16 %v1414_v51, %v1413_v60  ;;  %v1437_v0 = vrot.slane %v1413_v60, 4  ;;  %v2537_v51 = vpack.c.bf16 %v1500_v54, %v1499_v2  ;;  %v1501_v61 = vld [vmem:[%s4314_s5 + $0x170] sm:$0xff] }
 0x39a   :  { %2655 = vrot.lane.b32.xlu0 %v2654_v62, %s2692_s18  ;;  %v1502_v62 = vld [vmem:[%s4314_s5 + $0x178] sm:$0xff] }
 0x39c   :  { %1421 = vrot.lane.b32.xlu1 %v1418_v58, %s2691_s1 }
 0x39e   :  { %1439 = vrot.lane.b32.xlu0 %v1437_v0, %s2693_s19  ;;  %v2541_v0 = vpack.c.bf16 %v1502_v62, %v1501_v61 }
 0x3a0   :  { %1441 = vrot.lane.b32.xlu1 %v1438_v1, %s2693_s19 }
 0x40a   :  { %v4156_v35 = vpop.permute.xlu1 %1419 }
 0x40b   :  { %v1447_v6 = vsel %vm1423_vm7, %v1406_v56, %v4156_v35  ;;  %v1518_v56 = vld [vmem:[%s4314_s5 + $0x1f8] sm:$0xff] }
 0x40c   :  { %v1451_v52 = vmax.f32 %v1447_v6, 0.0  ;;  %v4166_v7 = vpop.permute.xlu0 %2655  ;;  %v2539_v60 = vpack.c.bf16 %v1518_v56, %v1517_v55  ;;  %v1750_v6 = vld [vmem:[%s4316_s7 + $0x18] sm:$0xff] }
 0x40d   :  { %v2658_v11 = vunpack.i.h.bf16 %v4166_v7  ;;  %v2657_v12 = vunpack.i.l.bf16 %v4166_v7  ;;  %v1751_v7 = vld [vmem:[%s4316_s7 + $0x20] sm:$0xff] }
 0x40e   :  { %1600 = vmatprep.mubr.f32.mxu0 %v1451_v52  ;;  %v4176_v17 = vpop.permute.xlu1 %1421 }
 0x40f   :  { %1601 = vmatmul.mubr.f32.vlgmr.msra.gmra.mrb[32].mxu0 %v1450_v9  ;;  %v1434_v20 = vsel %vm1433_vm8, %v2657_v12, %v2658_v11  ;;  %v1424_v58 = vsel %vm1423_vm7, %v4156_v35, %v4176_v17  ;;  %v1749_v35 = vld [vmem:[%s4316_s7 + $0x10] sm:$0xff]  ;;  %v2057_v17 = vld [vmem:[%s4315_s6] ss:$0 sm:$0xff]  ;;  %s2694_s6 = smov [#allocation3]  }
 0x410   :  { %2514 = vmatpush3.bf16.msra.mxu0 %v2513_v8  ;;  %v1440_v21 = vpop.permute.xlu0 %1439  ;;  %v1448_v1 = vsel %vm1433_vm8, %v1424_v58, %v2657_v12  ;;  %v2556_v52 = vpack.c.bf16 %v1750_v6, %v1749_v35  ;;  %v1752_v8 = vld [vmem:[%s4316_s7 + $0x28] sm:$0xff]  ;;  %v1753_v11 = vld [vmem:[%s4316_s7 + $0x30] sm:$0x3] }
 0x411   :  { %v1449_v24 = vsel %vm1443_vm9, %v1434_v20, %v1440_v21  ;;  %2516 = vmatprep.subr.bf16.mxu0 %v2515_v13  ;;  %v1452_v4 = vmax.f32 %v1448_v1, 0.0  ;;  %v2559_v9 = vpack.c.bf16 %v1752_v8, %v1751_v7 }
 0x412   :  { %v1453_v32 = vmax.f32 %v1449_v24, 0.0  ;;  %v1442_v34 = vpop.permute.xlu1 %1441 }
 0x413   :  { %v1444_v16 = vsel %vm1443_vm9, %v1440_v21, %v1442_v34 }
 0x414   :  { %v1454_v63 = vmax.f32 %v1444_v16, 0.0  ;;  %2518 = vmatpush3.bf16.msra.mxu0 %v2517_v23  ;;  %1670 = vmatprep.mubr.f32.mxu0 %v1453_v32 }
 0x415   :  { %2520 = vmatprep.subr.bf16.mxu0 %v2519_v26  ;;  %v2059_v26 = vld [vmem:[%s4317_s8] ss:$0 sm:$0xff]  ;;  %s1858_s8 = sshll.u32 %s2694_s6, 4  ;;  %s1859_s8 = int_to_ptr.vmem [resolvable:$true] %s1858_s8 }
 0x416   :  { %2160 = vmatmul.mubr.msk.f32.vlgmr.msra.gmra.mrb[14].mxu1 %vm1532_vm10, %v1454_v63  ;;  %s2663_s18 = scalar_lea.vmem %s1859_s8, 32  ;;  %p2668_p1 = scmp.lt.s32.totalorder %s1859_s8, %s1859_s8 }
 0x417   :  { %2176 = vmatprep.mubr.msk.f32.mxu1 %vm2689_vm6, %v2690_v41  ;;  %2554 = vmatpush3.bf16.msra.mxu1 %v2553_v3  ;;  %p2664_p0 = scmp.ne.s32.totalorder %s1859_s8, %s2663_s18  ;;  %p2669_p2 = scmp.lt.s32.totalorder %s2663_s18, %s2663_s18 }
 0x418   :  { %2522 = vmatpush3.bf16.msra.mxu0 %v2521_v36  ;;  %2555 = vmatprep.subr.bf16.mxu1 %v2688_v49 }
 0x419   :  { %2524 = vmatprep.subr.bf16.mxu0 %v2523_v10  ;;  %p2670_p3 = por %p2669_p2, %p2668_p1 }
 0x41b   :  { %2557 = vmatpush3.bf16.msra.mxu1 %v2556_v52  ;;  %p2671_p4 = pnand %p2670_p3, %p2664_p0 }
 0x41c   :  { %2526 = vmatpush3.bf16.msra.mxu0 %v2525_v31  ;;  %2558 = vmatprep.subr.bf16.mxu1 %v2688_v49 }
 0x41d   :  { %2528 = vmatprep.subr.bf16.mxu0 %v2527_v42 }
 0x41f   :  { %2560 = vmatpush3.bf16.msra.mxu1 %v2559_v9 }
 0x420   :  { %2530 = vmatpush3.bf16.msra.mxu0 %v2529_v37  ;;  %2174 = vmatprep.subr.mxu1 %v2690_v41 }
 0x421   :  { %2532 = vmatprep.subr.bf16.mxu0 %v2531_v40 }
 0x423   :  { %2175 = vmatpush3.msk.msra.mxu1 %vm1120_vm4, %v1753_v11 }
 0x424   :  { %2534 = vmatpush3.bf16.msra.mxu0 %v2533_v50 }
 0x425   :  { %2536 = vmatprep.subr.bf16.mxu0 %v2535_v33 }
 0x428   :  { %2538 = vmatpush3.bf16.msra.mxu0 %v2537_v51 }
 0x429   :  { %2540 = vmatprep.subr.bf16.mxu0 %v2539_v60 }
 0x42c   :  { %2542 = vmatpush3.bf16.msra.mxu0 %v2541_v0 }
 0x42f   :  { %1671 = vmatmul.mubr.f32.vlgmr.msra.gmra.mrb[34].mxu0 %v1452_v4 }
 0x4e2   :  { %v2094_v12 = vpop.f32.mrb[32].mxu0 }
 0x4e3   :  { %v2095_v49 = vpop.f32.mrb[33].mxu0 }
 0x4e4   :  { %v2096_v13 = vadd.f32 %v2095_v49, %v2094_v12 }
 0x4e6   :  { %v1603_v20 = vadd.f32 %v2096_v13, %v2057_v17 }
 0x4e9   :  { %v1742_v14 = vpop.f32.mrb[14].mxu1 }
 0x4ea   :  { %v2161_v15 = vpop.f32.mrb[15].mxu1 }
 0x502   :  { %v2129_v18 = vpop.f32.mrb[34].mxu0 }
 0x503   :  { %v2130_v19 = vpop.f32.mrb[35].mxu0 }
 0x504   :  { %v2131_v21 = vadd.f32 %v2130_v19, %v2129_v18 }
 0x506   :  { %v1673_v41 = vadd.f32 %v2131_v21, %v1603_v20 }
 0x508   :  { %v1743_v23 = vadd.f32 %v1742_v14, %v1673_v41 }
 0x50a   :  { %v1746_v24 = vmax.f32 %v1743_v23, 0.0 }
 0x50c   :  { %2177 = vmatmul.mubr.msk.f32.vlgmr.msra.gmra.mrb[16].mxu1 %vm1761_vm11, %v1746_v24 }
 0x5df   :  { %v1834_v27 = vpop.f32.mrb[16].mxu1 }
 0x5e0   :  { %v1835_v29 = vadd.f32 %v2059_v26, %v1834_v27  ;;  %v2178_v32 = vpop.f32.mrb[17].mxu1 }
 0x5e2   :  { %v1839_v34 = vsel %vm1838_vm12, %v1835_v29, -inf }
 0x5e3   :  { %1840 = vmax.xlane.f32.xlu0 %v1839_v34 }
 0x670   :  { %v1841_v45 = vpop.xlane.xlu0 %1840 }
 0x671   :  { %v1842_v57 = vsub.f32 %v1835_v29, %v1841_v45 }
 0x673   :  { %v1843_v16 = vmul.f32 1.442695, %v1842_v57 }
 0x675   :  { %2659 = vpow2.f32 %v1843_v16 }
 0x67f   :  { %v2660_v63 = vpop.eup %2659 }
 0x680   :  { %v1845_v36 = vsel %vm1838_vm12, %v2660_v63, 0.0 }
 0x681   :  { %1846 = vadd.xlane.f32.xlu1 %v1845_v36 }
 0x70e   :  { %v1847_v10 = vpop.xlane.xlu1 %1846 }
 0x70f   :  { %2661 = vlog2.f32 %v1847_v10 }
 0x719   :  { %v2662_v38 = vpop.eup %2661 }
 0x71a   :  { %v1849_v39 = vmul.f32 0.6931472, %v2662_v38 }
 0x71c   :  { %v1850_v25 = vsub.f32 %v1842_v57, %v1849_v39 }
 0x71e   :  { %1851 = vst.msk [vmem:[#allocation3] sm:$0x3] %vm1838_vm12, %v1850_v25 }
 0x71f   :  { %2674 = shalt.err (!%p2671_p4)
}
 0x720   :  { %s2675_s21 = scalar_lea.hbm %s4318_s9, 32 }
 0x721   :  { %p2676_p5 = scmp.ne.s32.totalorder %s4318_s9, %s2675_s21  ;;  %p2679_p6 = scmp.lt.u32.totalorder %s2675_s21, %s4318_s9 }
 0x723   :  { %p2681_p7 = pnand %p2679_p6, %p2676_p5 }
 0x725   :  { %2684 = shalt.err (!%p2681_p7)
}
 0x726   :  { %1861 = dma.vmem_to_hbm [thread:$0]  %s1859_s8, 32, %s4318_s9, [#allocation4]  }
 0x727   :  { %2685 = dma.done.wait [#allocation4], 32  }
 0x728   :  { %2686 = vsyncadd [#allocation4], 4294967264 }
 0x729   :  { %1865 = vsyncpa [#allocation4], 1 }

</bundles_post_ra>
